<compile_context>
chip_gen: v7x
topology: tpu7x:2x2x1
jax: 0.10.0
libtpu: 0.0.40
codegen_flags: <defaults>
</compile_context>

<pallas_src>
import math

import jax
import jax.numpy as jnp
from jax import lax
from jax.experimental import pallas as pl
from jax.experimental.pallas import tpu as pltpu


def _round_up(n, m):
    return ((n + m - 1) // m) * m


def _sigmoid(v):
    return 1.0 / (1.0 + jnp.exp(-v))


def _make_kernel(T, I, H, O, b_tile):
    H4 = 4 * H
    B = b_tile

    def run_layer(seq_tbi, w_ih, w_hh, b, return_seq):
        # One big MXU matmul for all timesteps' input projections (M = T*B).
        din = seq_tbi.shape[-1]
        xg = jnp.dot(seq_tbi.reshape(T * B, din), w_ih,
                     preferred_element_type=jnp.float32) + b      # (T*B, 4H)
        xg = xg.reshape(T, B, H4)

        h = jnp.zeros((B, H), jnp.float32)
        c = jnp.zeros((B, H), jnp.float32)
        ys = []
        for t in range(T):  # T static & small -> unrolled recurrence
            g = xg[t] + jnp.dot(h, w_hh, preferred_element_type=jnp.float32)
            i = _sigmoid(g[:, 0:H])
            f = _sigmoid(g[:, H:2 * H])
            gg = jnp.tanh(g[:, 2 * H:3 * H])
            o = _sigmoid(g[:, 3 * H:4 * H])
            c = f * c + i * gg
            h = o * jnp.tanh(c)
            if return_seq:
                ys.append(h)
        seq_out = jnp.stack(ys, axis=0) if return_seq else None   # (T, B, H)
        return seq_out, h

    def kernel(x_ref, wih0_ref, whh0_ref, b0_ref,
               wih1_ref, whh1_ref, b1_ref, wfc_ref, bfc_ref, o_ref):
        x = x_ref[...]                                            # (T, B, I)

        # layer 0: keep the full output sequence (it feeds layer 1)
        y0, _ = run_layer(x, wih0_ref[...], whh0_ref[...], b0_ref[...],
                          return_seq=True)
        # layer 1: only the final hidden state is used (PyTorch h_n)
        _, h1 = run_layer(y0, wih1_ref[...], whh1_ref[...], b1_ref[...],
                          return_seq=False)

        # fc(h_n): (B, H) x (H, O) + (1, O)
        o_ref[...] = (jnp.dot(h1, wfc_ref[...],
                              preferred_element_type=jnp.float32)
                      + bfc_ref[...])

    return kernel


def lstm_forward(x, kparams, b_tile=None):
    """x: (B, T, 20) -> (B, 2) float32 (or (2,) if B == 1, like .squeeze())."""
    x = x.astype(jnp.float32)
    B, T, I = x.shape
    wih0, whh0, b0, wih1, whh1, b1, wfc, bfc = kparams
    H = whh0.shape[0]
    O = wfc.shape[1]

    if b_tile is None:
        b_tile = min(128, _round_up(B, 8))   # sublane-aligned batch tile
    Bp = _round_up(B, b_tile)

    # time-major layout for cheap per-step leading-axis slices in the kernel
    xt = jnp.transpose(x, (1, 0, 2))                          # (T, B, I)
    if Bp != B:
        xt = jnp.pad(xt, ((0, 0), (0, Bp - B), (0, 0)))

    kernel = _make_kernel(T, I, H, O, b_tile)

    def full_spec(a):
        nd = a.ndim
        return pl.BlockSpec(a.shape, lambda n, _nd=nd: (0,) * _nd)

    out = pl.pallas_call(
        kernel,
        out_shape=jax.ShapeDtypeStruct((Bp, O), jnp.float32),
        grid_spec=pltpu.PrefetchScalarGridSpec(
            num_scalar_prefetch=0,
            grid=(Bp // b_tile,),
            in_specs=[pl.BlockSpec((T, b_tile, I), lambda n: (0, n, 0))] +
                     [full_spec(w) for w in kparams],
            out_specs=pl.BlockSpec((b_tile, O), lambda n: (n, 0)),
        ),
        compiler_params=pltpu.CompilerParams(
            dimension_semantics=("parallel",)),
    )(xt, *kparams)

    out = out[:B]
    if B == 1:
        out = out[0]   # mirror PyTorch's .squeeze() for batch size 1
    return out


# ---------------- deterministic parameter init (PyTorch-style) -------------

def init_params(key, input_size=20, hidden_size=20, out_features=2):
    H = hidden_size
    k = 1.0 / math.sqrt(H)
    keys = jax.random.split(key, 10)

    def u(kk, shape):
        return jax.random.uniform(kk, shape, jnp.float32, -k, k)

    w_ih0 = u(keys[0], (4 * H, input_size)); w_hh0 = u(keys[1], (4 * H, H))
    b_ih0 = u(keys[2], (4 * H,));            b_hh0 = u(keys[3], (4 * H,))
    w_ih1 = u(keys[4], (4 * H, H));          w_hh1 = u(keys[5], (4 * H, H))
    b_ih1 = u(keys[6], (4 * H,));            b_hh1 = u(keys[7], (4 * H,))
    w_fc = u(keys[8], (out_features, H));    b_fc = u(keys[9], (out_features,))

    raw = (w_ih0, w_hh0, b_ih0, b_hh0,
           w_ih1, w_hh1, b_ih1, b_hh1, w_fc, b_fc)

    # kernel layout: transposed weights, summed biases
    kparams = (
        jnp.asarray(w_ih0.T), jnp.asarray(w_hh0.T),
        (b_ih0 + b_hh0).reshape(1, 4 * H),
        jnp.asarray(w_ih1.T), jnp.asarray(w_hh1.T),
        (b_ih1 + b_hh1).reshape(1, 4 * H),
        jnp.asarray(w_fc.T), b_fc.reshape(1, out_features),
    )
    return raw, kparams


# ---------------- pure-JAX reference (mirrors the PyTorch module) ----------

def _lstm_layer_ref(x, w_ih, w_hh, b_ih, b_hh):
    B, T, _ = x.shape
    H = w_hh.shape[1]

    def step(carry, xt):
        h, c = carry
        g = (jnp.dot(xt, w_ih.T, precision=lax.Precision.HIGHEST) + b_ih
             + jnp.dot(h, w_hh.T, precision=lax.Precision.HIGHEST) + b_hh)
        i, f, gg, o = jnp.split(g, 4, axis=-1)
        i = _sigmoid(i); f = _sigmoid(f)
        gg = jnp.tanh(gg); o = _sigmoid(o)
        c = f * c + i * gg
        h = o * jnp.tanh(c)
        return (h, c), h

    init = (jnp.zeros((B, H), jnp.float32), jnp.zeros((B, H), jnp.float32))
    (hT, _), ys = lax.scan(step, init, jnp.swapaxes(x, 0, 1))
    return jnp.swapaxes(ys, 0, 1), hT


def reference_forward(x, raw):
    (w_ih0, w_hh0, b_ih0, b_hh0,
     w_ih1, w_hh1, b_ih1, b_hh1, w_fc, b_fc) = raw
    x = x.astype(jnp.float32)
    y0, _ = _lstm_layer_ref(x, w_ih0, w_hh0, b_ih0, b_hh0)
    _, h1 = _lstm_layer_ref(y0, w_ih1, w_hh1, b_ih1, b_hh1)  # h_n of lstm1
    out = jnp.dot(h1, w_fc.T, precision=lax.Precision.HIGHEST) + b_fc
    if x.shape[0] == 1:
        out = out[0]
    return out


if __name__ == "__main__":
    B, T, I, H, O = 2, 8, 20, 20, 2
    key = jax.random.PRNGKey(0)
    kx, kp = jax.random.split(key)
    x = jax.random.normal(kx, (B, T, I), jnp.float32)
    raw, kparams = init_params(kp, I, H, O)

    out = lstm_forward(x, kparams)
    out = jax.block_until_ready(out)

    ref = reference_forward(x, raw)
    assert out.shape == (B, O), out.shape
    assert jnp.allclose(out, ref, atol=1e-3, rtol=1e-3), \
        float(jnp.max(jnp.abs(out - ref)))
    print("KERNEL_OK")
</pallas_src>

<mosaic_0001>
module attributes {stable_mosaic.version = 11 : i64} {
  func.func @kernel(%arg0: i32, %arg1: memref<8x8x20xf32, #tpu.memory_space<vmem>>, %arg2: memref<20x80xf32, #tpu.memory_space<vmem>>, %arg3: memref<20x80xf32, #tpu.memory_space<vmem>>, %arg4: memref<1x80xf32, #tpu.memory_space<vmem>>, %arg5: memref<20x80xf32, #tpu.memory_space<vmem>>, %arg6: memref<20x80xf32, #tpu.memory_space<vmem>>, %arg7: memref<1x80xf32, #tpu.memory_space<vmem>>, %arg8: memref<20x2xf32, #tpu.memory_space<vmem>>, %arg9: memref<1x2xf32, #tpu.memory_space<vmem>>, %arg10: memref<8x2xf32, #tpu.memory_space<vmem>>) attributes {dimension_semantics = [#tpu.dimension_semantics<parallel>], iteration_bounds = array<i64: 1>, scalar_prefetch = 0 : i64, scratch_operands = 0 : i64, tpu.core_type = #tpu.core_type<tc>, window_params = [{transform_indices = @transform_0, window_bounds = array<i64: 8, 8, 20>}, {pipeline_mode = #tpu.pipeline_mode<synchronous>, transform_indices = @transform_1, window_bounds = array<i64: 20, 80>}, {pipeline_mode = #tpu.pipeline_mode<synchronous>, transform_indices = @transform_2, window_bounds = array<i64: 20, 80>}, {pipeline_mode = #tpu.pipeline_mode<synchronous>, transform_indices = @transform_3, window_bounds = array<i64: 1, 80>}, {pipeline_mode = #tpu.pipeline_mode<synchronous>, transform_indices = @transform_4, window_bounds = array<i64: 20, 80>}, {pipeline_mode = #tpu.pipeline_mode<synchronous>, transform_indices = @transform_5, window_bounds = array<i64: 20, 80>}, {pipeline_mode = #tpu.pipeline_mode<synchronous>, transform_indices = @transform_6, window_bounds = array<i64: 1, 80>}, {pipeline_mode = #tpu.pipeline_mode<synchronous>, transform_indices = @transform_7, window_bounds = array<i64: 20, 2>}, {pipeline_mode = #tpu.pipeline_mode<synchronous>, transform_indices = @transform_8, window_bounds = array<i64: 1, 2>}, {transform_indices = @transform_9, window_bounds = array<i64: 8, 2>}]} {
    %c0 = arith.constant 0 : index
    %c0_0 = arith.constant 0 : index
    %c0_1 = arith.constant 0 : index
    %0 = vector.load %arg1[%c0, %c0_0, %c0_1] : memref<8x8x20xf32, #tpu.memory_space<vmem>>, vector<8x8x20xf32>
    %c0_2 = arith.constant 0 : index
    %c0_3 = arith.constant 0 : index
    %1 = vector.load %arg2[%c0_2, %c0_3] : memref<20x80xf32, #tpu.memory_space<vmem>>, vector<20x80xf32>
    %c0_4 = arith.constant 0 : index
    %c0_5 = arith.constant 0 : index
    %2 = vector.load %arg3[%c0_4, %c0_5] : memref<20x80xf32, #tpu.memory_space<vmem>>, vector<20x80xf32>
    %c0_6 = arith.constant 0 : index
    %c0_7 = arith.constant 0 : index
    %3 = vector.load %arg4[%c0_6, %c0_7] : memref<1x80xf32, #tpu.memory_space<vmem>>, vector<1x80xf32>
    %4 = vector.shape_cast %0 : vector<8x8x20xf32> to vector<64x20xf32>
    %cst = arith.constant dense<0.000000e+00> : vector<64x80xf32>
    %5 = tpu.matmul %4, %1, %cst {dimension_numbers = #tpu.dot_dimension_numbers<[1], [0], [0], [1], [0, 0, 1, 1], [], []>} : vector<64x20xf32>, vector<20x80xf32>, vector<64x80xf32> -> vector<64x80xf32>
    %6 = vector.broadcast %3 : vector<1x80xf32> to vector<64x80xf32>
    %7 = arith.addf %5, %6 : vector<64x80xf32>
    %8 = vector.shape_cast %7 : vector<64x80xf32> to vector<8x8x80xf32>
    %cst_8 = arith.constant 0.000000e+00 : f32
    %9 = vector.broadcast %cst_8 : f32 to vector<8x20xf32>
    %cst_9 = arith.constant 0.000000e+00 : f32
    %10 = vector.broadcast %cst_9 : f32 to vector<8x20xf32>
    %11 = vector.extract_strided_slice %8 {offsets = [0, 0, 0], sizes = [1, 8, 80], strides = [1, 1, 1]} : vector<8x8x80xf32> to vector<1x8x80xf32>
    %12 = vector.shape_cast %11 : vector<1x8x80xf32> to vector<8x80xf32>
    %cst_10 = arith.constant dense<0.000000e+00> : vector<8x80xf32>
    %13 = tpu.matmul %9, %2, %cst_10 {dimension_numbers = #tpu.dot_dimension_numbers<[1], [0], [0], [1], [0, 0, 1, 1], [], []>} : vector<8x20xf32>, vector<20x80xf32>, vector<8x80xf32> -> vector<8x80xf32>
    %14 = arith.addf %12, %13 : vector<8x80xf32>
    %15 = vector.extract_strided_slice %14 {offsets = [0, 0], sizes = [8, 20], strides = [1, 1]} : vector<8x80xf32> to vector<8x20xf32>
    %cst_11 = arith.constant 0.000000e+00 : f32
    %16 = vector.broadcast %cst_11 : f32 to vector<8x20xf32>
    %17 = arith.subf %16, %15 : vector<8x20xf32>
    %18 = math.exp %17 : vector<8x20xf32>
    %cst_12 = arith.constant 1.000000e+00 : f32
    %19 = vector.broadcast %cst_12 : f32 to vector<8x20xf32>
    %20 = arith.addf %19, %18 : vector<8x20xf32>
    %cst_13 = arith.constant 1.000000e+00 : f32
    %21 = vector.broadcast %cst_13 : f32 to vector<8x20xf32>
    %22 = arith.divf %21, %20 : vector<8x20xf32>
    %23 = vector.extract_strided_slice %14 {offsets = [0, 20], sizes = [8, 20], strides = [1, 1]} : vector<8x80xf32> to vector<8x20xf32>
    %cst_14 = arith.constant 0.000000e+00 : f32
    %24 = vector.broadcast %cst_14 : f32 to vector<8x20xf32>
    %25 = arith.subf %24, %23 : vector<8x20xf32>
    %26 = math.exp %25 : vector<8x20xf32>
    %cst_15 = arith.constant 1.000000e+00 : f32
    %27 = vector.broadcast %cst_15 : f32 to vector<8x20xf32>
    %28 = arith.addf %27, %26 : vector<8x20xf32>
    %cst_16 = arith.constant 1.000000e+00 : f32
    %29 = vector.broadcast %cst_16 : f32 to vector<8x20xf32>
    %30 = arith.divf %29, %28 : vector<8x20xf32>
    %31 = vector.extract_strided_slice %14 {offsets = [0, 40], sizes = [8, 20], strides = [1, 1]} : vector<8x80xf32> to vector<8x20xf32>
    %32 = math.tanh %31 : vector<8x20xf32>
    %33 = vector.extract_strided_slice %14 {offsets = [0, 60], sizes = [8, 20], strides = [1, 1]} : vector<8x80xf32> to vector<8x20xf32>
    %cst_17 = arith.constant 0.000000e+00 : f32
    %34 = vector.broadcast %cst_17 : f32 to vector<8x20xf32>
    %35 = arith.subf %34, %33 : vector<8x20xf32>
    %36 = math.exp %35 : vector<8x20xf32>
    %cst_18 = arith.constant 1.000000e+00 : f32
    %37 = vector.broadcast %cst_18 : f32 to vector<8x20xf32>
    %38 = arith.addf %37, %36 : vector<8x20xf32>
    %cst_19 = arith.constant 1.000000e+00 : f32
    %39 = vector.broadcast %cst_19 : f32 to vector<8x20xf32>
    %40 = arith.divf %39, %38 : vector<8x20xf32>
    %41 = arith.mulf %30, %10 : vector<8x20xf32>
    %42 = arith.mulf %22, %32 : vector<8x20xf32>
    %43 = arith.addf %41, %42 : vector<8x20xf32>
    %44 = math.tanh %43 : vector<8x20xf32>
    %45 = arith.mulf %40, %44 : vector<8x20xf32>
    %46 = vector.extract_strided_slice %8 {offsets = [1, 0, 0], sizes = [1, 8, 80], strides = [1, 1, 1]} : vector<8x8x80xf32> to vector<1x8x80xf32>
    %47 = vector.shape_cast %46 : vector<1x8x80xf32> to vector<8x80xf32>
    %cst_20 = arith.constant dense<0.000000e+00> : vector<8x80xf32>
    %48 = tpu.matmul %45, %2, %cst_20 {dimension_numbers = #tpu.dot_dimension_numbers<[1], [0], [0], [1], [0, 0, 1, 1], [], []>} : vector<8x20xf32>, vector<20x80xf32>, vector<8x80xf32> -> vector<8x80xf32>
    %49 = arith.addf %47, %48 : vector<8x80xf32>
    %50 = vector.extract_strided_slice %49 {offsets = [0, 0], sizes = [8, 20], strides = [1, 1]} : vector<8x80xf32> to vector<8x20xf32>
    %cst_21 = arith.constant 0.000000e+00 : f32
    %51 = vector.broadcast %cst_21 : f32 to vector<8x20xf32>
    %52 = arith.subf %51, %50 : vector<8x20xf32>
    %53 = math.exp %52 : vector<8x20xf32>
    %cst_22 = arith.constant 1.000000e+00 : f32
    %54 = vector.broadcast %cst_22 : f32 to vector<8x20xf32>
    %55 = arith.addf %54, %53 : vector<8x20xf32>
    %cst_23 = arith.constant 1.000000e+00 : f32
    %56 = vector.broadcast %cst_23 : f32 to vector<8x20xf32>
    %57 = arith.divf %56, %55 : vector<8x20xf32>
    %58 = vector.extract_strided_slice %49 {offsets = [0, 20], sizes = [8, 20], strides = [1, 1]} : vector<8x80xf32> to vector<8x20xf32>
    %cst_24 = arith.constant 0.000000e+00 : f32
    %59 = vector.broadcast %cst_24 : f32 to vector<8x20xf32>
    %60 = arith.subf %59, %58 : vector<8x20xf32>
    %61 = math.exp %60 : vector<8x20xf32>
    %cst_25 = arith.constant 1.000000e+00 : f32
    %62 = vector.broadcast %cst_25 : f32 to vector<8x20xf32>
    %63 = arith.addf %62, %61 : vector<8x20xf32>
    %cst_26 = arith.constant 1.000000e+00 : f32
    %64 = vector.broadcast %cst_26 : f32 to vector<8x20xf32>
    %65 = arith.divf %64, %63 : vector<8x20xf32>
    %66 = vector.extract_strided_slice %49 {offsets = [0, 40], sizes = [8, 20], strides = [1, 1]} : vector<8x80xf32> to vector<8x20xf32>
    %67 = math.tanh %66 : vector<8x20xf32>
    %68 = vector.extract_strided_slice %49 {offsets = [0, 60], sizes = [8, 20], strides = [1, 1]} : vector<8x80xf32> to vector<8x20xf32>
    %cst_27 = arith.constant 0.000000e+00 : f32
    %69 = vector.broadcast %cst_27 : f32 to vector<8x20xf32>
    %70 = arith.subf %69, %68 : vector<8x20xf32>
    %71 = math.exp %70 : vector<8x20xf32>
    %cst_28 = arith.constant 1.000000e+00 : f32
    %72 = vector.broadcast %cst_28 : f32 to vector<8x20xf32>
    %73 = arith.addf %72, %71 : vector<8x20xf32>
    %cst_29 = arith.constant 1.000000e+00 : f32
    %74 = vector.broadcast %cst_29 : f32 to vector<8x20xf32>
    %75 = arith.divf %74, %73 : vector<8x20xf32>
    %76 = arith.mulf %65, %43 : vector<8x20xf32>
    %77 = arith.mulf %57, %67 : vector<8x20xf32>
    %78 = arith.addf %76, %77 : vector<8x20xf32>
    %79 = math.tanh %78 : vector<8x20xf32>
    %80 = arith.mulf %75, %79 : vector<8x20xf32>
    %81 = vector.extract_strided_slice %8 {offsets = [2, 0, 0], sizes = [1, 8, 80], strides = [1, 1, 1]} : vector<8x8x80xf32> to vector<1x8x80xf32>
    %82 = vector.shape_cast %81 : vector<1x8x80xf32> to vector<8x80xf32>
    %cst_30 = arith.constant dense<0.000000e+00> : vector<8x80xf32>
    %83 = tpu.matmul %80, %2, %cst_30 {dimension_numbers = #tpu.dot_dimension_numbers<[1], [0], [0], [1], [0, 0, 1, 1], [], []>} : vector<8x20xf32>, vector<20x80xf32>, vector<8x80xf32> -> vector<8x80xf32>
    %84 = arith.addf %82, %83 : vector<8x80xf32>
    %85 = vector.extract_strided_slice %84 {offsets = [0, 0], sizes = [8, 20], strides = [1, 1]} : vector<8x80xf32> to vector<8x20xf32>
    %cst_31 = arith.constant 0.000000e+00 : f32
    %86 = vector.broadcast %cst_31 : f32 to vector<8x20xf32>
    %87 = arith.subf %86, %85 : vector<8x20xf32>
    %88 = math.exp %87 : vector<8x20xf32>
    %cst_32 = arith.constant 1.000000e+00 : f32
    %89 = vector.broadcast %cst_32 : f32 to vector<8x20xf32>
    %90 = arith.addf %89, %88 : vector<8x20xf32>
    %cst_33 = arith.constant 1.000000e+00 : f32
    %91 = vector.broadcast %cst_33 : f32 to vector<8x20xf32>
    %92 = arith.divf %91, %90 : vector<8x20xf32>
    %93 = vector.extract_strided_slice %84 {offsets = [0, 20], sizes = [8, 20], strides = [1, 1]} : vector<8x80xf32> to vector<8x20xf32>
    %cst_34 = arith.constant 0.000000e+00 : f32
    %94 = vector.broadcast %cst_34 : f32 to vector<8x20xf32>
    %95 = arith.subf %94, %93 : vector<8x20xf32>
    %96 = math.exp %95 : vector<8x20xf32>
    %cst_35 = arith.constant 1.000000e+00 : f32
    %97 = vector.broadcast %cst_35 : f32 to vector<8x20xf32>
    %98 = arith.addf %97, %96 : vector<8x20xf32>
    %cst_36 = arith.constant 1.000000e+00 : f32
    %99 = vector.broadcast %cst_36 : f32 to vector<8x20xf32>
    %100 = arith.divf %99, %98 : vector<8x20xf32>
    %101 = vector.extract_strided_slice %84 {offsets = [0, 40], sizes = [8, 20], strides = [1, 1]} : vector<8x80xf32> to vector<8x20xf32>
    %102 = math.tanh %101 : vector<8x20xf32>
    %103 = vector.extract_strided_slice %84 {offsets = [0, 60], sizes = [8, 20], strides = [1, 1]} : vector<8x80xf32> to vector<8x20xf32>
    %cst_37 = arith.constant 0.000000e+00 : f32
    %104 = vector.broadcast %cst_37 : f32 to vector<8x20xf32>
    %105 = arith.subf %104, %103 : vector<8x20xf32>
    %106 = math.exp %105 : vector<8x20xf32>
    %cst_38 = arith.constant 1.000000e+00 : f32
    %107 = vector.broadcast %cst_38 : f32 to vector<8x20xf32>
    %108 = arith.addf %107, %106 : vector<8x20xf32>
    %cst_39 = arith.constant 1.000000e+00 : f32
    %109 = vector.broadcast %cst_39 : f32 to vector<8x20xf32>
    %110 = arith.divf %109, %108 : vector<8x20xf32>
    %111 = arith.mulf %100, %78 : vector<8x20xf32>
    %112 = arith.mulf %92, %102 : vector<8x20xf32>
    %113 = arith.addf %111, %112 : vector<8x20xf32>
    %114 = math.tanh %113 : vector<8x20xf32>
    %115 = arith.mulf %110, %114 : vector<8x20xf32>
    %116 = vector.extract_strided_slice %8 {offsets = [3, 0, 0], sizes = [1, 8, 80], strides = [1, 1, 1]} : vector<8x8x80xf32> to vector<1x8x80xf32>
    %117 = vector.shape_cast %116 : vector<1x8x80xf32> to vector<8x80xf32>
    %cst_40 = arith.constant dense<0.000000e+00> : vector<8x80xf32>
    %118 = tpu.matmul %115, %2, %cst_40 {dimension_numbers = #tpu.dot_dimension_numbers<[1], [0], [0], [1], [0, 0, 1, 1], [], []>} : vector<8x20xf32>, vector<20x80xf32>, vector<8x80xf32> -> vector<8x80xf32>
    %119 = arith.addf %117, %118 : vector<8x80xf32>
    %120 = vector.extract_strided_slice %119 {offsets = [0, 0], sizes = [8, 20], strides = [1, 1]} : vector<8x80xf32> to vector<8x20xf32>
    %cst_41 = arith.constant 0.000000e+00 : f32
    %121 = vector.broadcast %cst_41 : f32 to vector<8x20xf32>
    %122 = arith.subf %121, %120 : vector<8x20xf32>
    %123 = math.exp %122 : vector<8x20xf32>
    %cst_42 = arith.constant 1.000000e+00 : f32
    %124 = vector.broadcast %cst_42 : f32 to vector<8x20xf32>
    %125 = arith.addf %124, %123 : vector<8x20xf32>
    %cst_43 = arith.constant 1.000000e+00 : f32
    %126 = vector.broadcast %cst_43 : f32 to vector<8x20xf32>
    %127 = arith.divf %126, %125 : vector<8x20xf32>
    %128 = vector.extract_strided_slice %119 {offsets = [0, 20], sizes = [8, 20], strides = [1, 1]} : vector<8x80xf32> to vector<8x20xf32>
    %cst_44 = arith.constant 0.000000e+00 : f32
    %129 = vector.broadcast %cst_44 : f32 to vector<8x20xf32>
    %130 = arith.subf %129, %128 : vector<8x20xf32>
    %131 = math.exp %130 : vector<8x20xf32>
    %cst_45 = arith.constant 1.000000e+00 : f32
    %132 = vector.broadcast %cst_45 : f32 to vector<8x20xf32>
    %133 = arith.addf %132, %131 : vector<8x20xf32>
    %cst_46 = arith.constant 1.000000e+00 : f32
    %134 = vector.broadcast %cst_46 : f32 to vector<8x20xf32>
    %135 = arith.divf %134, %133 : vector<8x20xf32>
    %136 = vector.extract_strided_slice %119 {offsets = [0, 40], sizes = [8, 20], strides = [1, 1]} : vector<8x80xf32> to vector<8x20xf32>
    %137 = math.tanh %136 : vector<8x20xf32>
    %138 = vector.extract_strided_slice %119 {offsets = [0, 60], sizes = [8, 20], strides = [1, 1]} : vector<8x80xf32> to vector<8x20xf32>
    %cst_47 = arith.constant 0.000000e+00 : f32
    %139 = vector.broadcast %cst_47 : f32 to vector<8x20xf32>
    %140 = arith.subf %139, %138 : vector<8x20xf32>
    %141 = math.exp %140 : vector<8x20xf32>
    %cst_48 = arith.constant 1.000000e+00 : f32
    %142 = vector.broadcast %cst_48 : f32 to vector<8x20xf32>
    %143 = arith.addf %142, %141 : vector<8x20xf32>
    %cst_49 = arith.constant 1.000000e+00 : f32
    %144 = vector.broadcast %cst_49 : f32 to vector<8x20xf32>
    %145 = arith.divf %144, %143 : vector<8x20xf32>
    %146 = arith.mulf %135, %113 : vector<8x20xf32>
    %147 = arith.mulf %127, %137 : vector<8x20xf32>
    %148 = arith.addf %146, %147 : vector<8x20xf32>
    %149 = math.tanh %148 : vector<8x20xf32>
    %150 = arith.mulf %145, %149 : vector<8x20xf32>
    %151 = vector.extract_strided_slice %8 {offsets = [4, 0, 0], sizes = [1, 8, 80], strides = [1, 1, 1]} : vector<8x8x80xf32> to vector<1x8x80xf32>
    %152 = vector.shape_cast %151 : vector<1x8x80xf32> to vector<8x80xf32>
    %cst_50 = arith.constant dense<0.000000e+00> : vector<8x80xf32>
    %153 = tpu.matmul %150, %2, %cst_50 {dimension_numbers = #tpu.dot_dimension_numbers<[1], [0], [0], [1], [0, 0, 1, 1], [], []>} : vector<8x20xf32>, vector<20x80xf32>, vector<8x80xf32> -> vector<8x80xf32>
    %154 = arith.addf %152, %153 : vector<8x80xf32>
    %155 = vector.extract_strided_slice %154 {offsets = [0, 0], sizes = [8, 20], strides = [1, 1]} : vector<8x80xf32> to vector<8x20xf32>
    %cst_51 = arith.constant 0.000000e+00 : f32
    %156 = vector.broadcast %cst_51 : f32 to vector<8x20xf32>
    %157 = arith.subf %156, %155 : vector<8x20xf32>
    %158 = math.exp %157 : vector<8x20xf32>
    %cst_52 = arith.constant 1.000000e+00 : f32
    %159 = vector.broadcast %cst_52 : f32 to vector<8x20xf32>
    %160 = arith.addf %159, %158 : vector<8x20xf32>
    %cst_53 = arith.constant 1.000000e+00 : f32
    %161 = vector.broadcast %cst_53 : f32 to vector<8x20xf32>
    %162 = arith.divf %161, %160 : vector<8x20xf32>
    %163 = vector.extract_strided_slice %154 {offsets = [0, 20], sizes = [8, 20], strides = [1, 1]} : vector<8x80xf32> to vector<8x20xf32>
    %cst_54 = arith.constant 0.000000e+00 : f32
    %164 = vector.broadcast %cst_54 : f32 to vector<8x20xf32>
    %165 = arith.subf %164, %163 : vector<8x20xf32>
    %166 = math.exp %165 : vector<8x20xf32>
    %cst_55 = arith.constant 1.000000e+00 : f32
    %167 = vector.broadcast %cst_55 : f32 to vector<8x20xf32>
    %168 = arith.addf %167, %166 : vector<8x20xf32>
    %cst_56 = arith.constant 1.000000e+00 : f32
    %169 = vector.broadcast %cst_56 : f32 to vector<8x20xf32>
    %170 = arith.divf %169, %168 : vector<8x20xf32>
    %171 = vector.extract_strided_slice %154 {offsets = [0, 40], sizes = [8, 20], strides = [1, 1]} : vector<8x80xf32> to vector<8x20xf32>
    %172 = math.tanh %171 : vector<8x20xf32>
    %173 = vector.extract_strided_slice %154 {offsets = [0, 60], sizes = [8, 20], strides = [1, 1]} : vector<8x80xf32> to vector<8x20xf32>
    %cst_57 = arith.constant 0.000000e+00 : f32
    %174 = vector.broadcast %cst_57 : f32 to vector<8x20xf32>
    %175 = arith.subf %174, %173 : vector<8x20xf32>
    %176 = math.exp %175 : vector<8x20xf32>
    %cst_58 = arith.constant 1.000000e+00 : f32
    %177 = vector.broadcast %cst_58 : f32 to vector<8x20xf32>
    %178 = arith.addf %177, %176 : vector<8x20xf32>
    %cst_59 = arith.constant 1.000000e+00 : f32
    %179 = vector.broadcast %cst_59 : f32 to vector<8x20xf32>
    %180 = arith.divf %179, %178 : vector<8x20xf32>
    %181 = arith.mulf %170, %148 : vector<8x20xf32>
    %182 = arith.mulf %162, %172 : vector<8x20xf32>
    %183 = arith.addf %181, %182 : vector<8x20xf32>
    %184 = math.tanh %183 : vector<8x20xf32>
    %185 = arith.mulf %180, %184 : vector<8x20xf32>
    %186 = vector.extract_strided_slice %8 {offsets = [5, 0, 0], sizes = [1, 8, 80], strides = [1, 1, 1]} : vector<8x8x80xf32> to vector<1x8x80xf32>
    %187 = vector.shape_cast %186 : vector<1x8x80xf32> to vector<8x80xf32>
    %cst_60 = arith.constant dense<0.000000e+00> : vector<8x80xf32>
    %188 = tpu.matmul %185, %2, %cst_60 {dimension_numbers = #tpu.dot_dimension_numbers<[1], [0], [0], [1], [0, 0, 1, 1], [], []>} : vector<8x20xf32>, vector<20x80xf32>, vector<8x80xf32> -> vector<8x80xf32>
    %189 = arith.addf %187, %188 : vector<8x80xf32>
    %190 = vector.extract_strided_slice %189 {offsets = [0, 0], sizes = [8, 20], strides = [1, 1]} : vector<8x80xf32> to vector<8x20xf32>
    %cst_61 = arith.constant 0.000000e+00 : f32
    %191 = vector.broadcast %cst_61 : f32 to vector<8x20xf32>
    %192 = arith.subf %191, %190 : vector<8x20xf32>
    %193 = math.exp %192 : vector<8x20xf32>
    %cst_62 = arith.constant 1.000000e+00 : f32
    %194 = vector.broadcast %cst_62 : f32 to vector<8x20xf32>
    %195 = arith.addf %194, %193 : vector<8x20xf32>
    %cst_63 = arith.constant 1.000000e+00 : f32
    %196 = vector.broadcast %cst_63 : f32 to vector<8x20xf32>
    %197 = arith.divf %196, %195 : vector<8x20xf32>
    %198 = vector.extract_strided_slice %189 {offsets = [0, 20], sizes = [8, 20], strides = [1, 1]} : vector<8x80xf32> to vector<8x20xf32>
    %cst_64 = arith.constant 0.000000e+00 : f32
    %199 = vector.broadcast %cst_64 : f32 to vector<8x20xf32>
    %200 = arith.subf %199, %198 : vector<8x20xf32>
    %201 = math.exp %200 : vector<8x20xf32>
    %cst_65 = arith.constant 1.000000e+00 : f32
    %202 = vector.broadcast %cst_65 : f32 to vector<8x20xf32>
    %203 = arith.addf %202, %201 : vector<8x20xf32>
    %cst_66 = arith.constant 1.000000e+00 : f32
    %204 = vector.broadcast %cst_66 : f32 to vector<8x20xf32>
    %205 = arith.divf %204, %203 : vector<8x20xf32>
    %206 = vector.extract_strided_slice %189 {offsets = [0, 40], sizes = [8, 20], strides = [1, 1]} : vector<8x80xf32> to vector<8x20xf32>
    %207 = math.tanh %206 : vector<8x20xf32>
    %208 = vector.extract_strided_slice %189 {offsets = [0, 60], sizes = [8, 20], strides = [1, 1]} : vector<8x80xf32> to vector<8x20xf32>
    %cst_67 = arith.constant 0.000000e+00 : f32
    %209 = vector.broadcast %cst_67 : f32 to vector<8x20xf32>
    %210 = arith.subf %209, %208 : vector<8x20xf32>
    %211 = math.exp %210 : vector<8x20xf32>
    %cst_68 = arith.constant 1.000000e+00 : f32
    %212 = vector.broadcast %cst_68 : f32 to vector<8x20xf32>
    %213 = arith.addf %212, %211 : vector<8x20xf32>
    %cst_69 = arith.constant 1.000000e+00 : f32
    %214 = vector.broadcast %cst_69 : f32 to vector<8x20xf32>
    %215 = arith.divf %214, %213 : vector<8x20xf32>
    %216 = arith.mulf %205, %183 : vector<8x20xf32>
    %217 = arith.mulf %197, %207 : vector<8x20xf32>
    %218 = arith.addf %216, %217 : vector<8x20xf32>
    %219 = math.tanh %218 : vector<8x20xf32>
    %220 = arith.mulf %215, %219 : vector<8x20xf32>
    %221 = vector.extract_strided_slice %8 {offsets = [6, 0, 0], sizes = [1, 8, 80], strides = [1, 1, 1]} : vector<8x8x80xf32> to vector<1x8x80xf32>
    %222 = vector.shape_cast %221 : vector<1x8x80xf32> to vector<8x80xf32>
    %cst_70 = arith.constant dense<0.000000e+00> : vector<8x80xf32>
    %223 = tpu.matmul %220, %2, %cst_70 {dimension_numbers = #tpu.dot_dimension_numbers<[1], [0], [0], [1], [0, 0, 1, 1], [], []>} : vector<8x20xf32>, vector<20x80xf32>, vector<8x80xf32> -> vector<8x80xf32>
    %224 = arith.addf %222, %223 : vector<8x80xf32>
    %225 = vector.extract_strided_slice %224 {offsets = [0, 0], sizes = [8, 20], strides = [1, 1]} : vector<8x80xf32> to vector<8x20xf32>
    %cst_71 = arith.constant 0.000000e+00 : f32
    %226 = vector.broadcast %cst_71 : f32 to vector<8x20xf32>
    %227 = arith.subf %226, %225 : vector<8x20xf32>
    %228 = math.exp %227 : vector<8x20xf32>
    %cst_72 = arith.constant 1.000000e+00 : f32
    %229 = vector.broadcast %cst_72 : f32 to vector<8x20xf32>
    %230 = arith.addf %229, %228 : vector<8x20xf32>
    %cst_73 = arith.constant 1.000000e+00 : f32
    %231 = vector.broadcast %cst_73 : f32 to vector<8x20xf32>
    %232 = arith.divf %231, %230 : vector<8x20xf32>
    %233 = vector.extract_strided_slice %224 {offsets = [0, 20], sizes = [8, 20], strides = [1, 1]} : vector<8x80xf32> to vector<8x20xf32>
    %cst_74 = arith.constant 0.000000e+00 : f32
    %234 = vector.broadcast %cst_74 : f32 to vector<8x20xf32>
    %235 = arith.subf %234, %233 : vector<8x20xf32>
    %236 = math.exp %235 : vector<8x20xf32>
    %cst_75 = arith.constant 1.000000e+00 : f32
    %237 = vector.broadcast %cst_75 : f32 to vector<8x20xf32>
    %238 = arith.addf %237, %236 : vector<8x20xf32>
    %cst_76 = arith.constant 1.000000e+00 : f32
    %239 = vector.broadcast %cst_76 : f32 to vector<8x20xf32>
    %240 = arith.divf %239, %238 : vector<8x20xf32>
    %241 = vector.extract_strided_slice %224 {offsets = [0, 40], sizes = [8, 20], strides = [1, 1]} : vector<8x80xf32> to vector<8x20xf32>
    %242 = math.tanh %241 : vector<8x20xf32>
    %243 = vector.extract_strided_slice %224 {offsets = [0, 60], sizes = [8, 20], strides = [1, 1]} : vector<8x80xf32> to vector<8x20xf32>
    %cst_77 = arith.constant 0.000000e+00 : f32
    %244 = vector.broadcast %cst_77 : f32 to vector<8x20xf32>
    %245 = arith.subf %244, %243 : vector<8x20xf32>
    %246 = math.exp %245 : vector<8x20xf32>
    %cst_78 = arith.constant 1.000000e+00 : f32
    %247 = vector.broadcast %cst_78 : f32 to vector<8x20xf32>
    %248 = arith.addf %247, %246 : vector<8x20xf32>
    %cst_79 = arith.constant 1.000000e+00 : f32
    %249 = vector.broadcast %cst_79 : f32 to vector<8x20xf32>
    %250 = arith.divf %249, %248 : vector<8x20xf32>
    %251 = arith.mulf %240, %218 : vector<8x20xf32>
    %252 = arith.mulf %232, %242 : vector<8x20xf32>
    %253 = arith.addf %251, %252 : vector<8x20xf32>
    %254 = math.tanh %253 : vector<8x20xf32>
    %255 = arith.mulf %250, %254 : vector<8x20xf32>
    %256 = vector.extract_strided_slice %8 {offsets = [7, 0, 0], sizes = [1, 8, 80], strides = [1, 1, 1]} : vector<8x8x80xf32> to vector<1x8x80xf32>
    %257 = vector.shape_cast %256 : vector<1x8x80xf32> to vector<8x80xf32>
    %cst_80 = arith.constant dense<0.000000e+00> : vector<8x80xf32>
    %258 = tpu.matmul %255, %2, %cst_80 {dimension_numbers = #tpu.dot_dimension_numbers<[1], [0], [0], [1], [0, 0, 1, 1], [], []>} : vector<8x20xf32>, vector<20x80xf32>, vector<8x80xf32> -> vector<8x80xf32>
    %259 = arith.addf %257, %258 : vector<8x80xf32>
    %260 = vector.extract_strided_slice %259 {offsets = [0, 0], sizes = [8, 20], strides = [1, 1]} : vector<8x80xf32> to vector<8x20xf32>
    %cst_81 = arith.constant 0.000000e+00 : f32
    %261 = vector.broadcast %cst_81 : f32 to vector<8x20xf32>
    %262 = arith.subf %261, %260 : vector<8x20xf32>
    %263 = math.exp %262 : vector<8x20xf32>
    %cst_82 = arith.constant 1.000000e+00 : f32
    %264 = vector.broadcast %cst_82 : f32 to vector<8x20xf32>
    %265 = arith.addf %264, %263 : vector<8x20xf32>
    %cst_83 = arith.constant 1.000000e+00 : f32
    %266 = vector.broadcast %cst_83 : f32 to vector<8x20xf32>
    %267 = arith.divf %266, %265 : vector<8x20xf32>
    %268 = vector.extract_strided_slice %259 {offsets = [0, 20], sizes = [8, 20], strides = [1, 1]} : vector<8x80xf32> to vector<8x20xf32>
    %cst_84 = arith.constant 0.000000e+00 : f32
    %269 = vector.broadcast %cst_84 : f32 to vector<8x20xf32>
    %270 = arith.subf %269, %268 : vector<8x20xf32>
    %271 = math.exp %270 : vector<8x20xf32>
    %cst_85 = arith.constant 1.000000e+00 : f32
    %272 = vector.broadcast %cst_85 : f32 to vector<8x20xf32>
    %273 = arith.addf %272, %271 : vector<8x20xf32>
    %cst_86 = arith.constant 1.000000e+00 : f32
    %274 = vector.broadcast %cst_86 : f32 to vector<8x20xf32>
    %275 = arith.divf %274, %273 : vector<8x20xf32>
    %276 = vector.extract_strided_slice %259 {offsets = [0, 40], sizes = [8, 20], strides = [1, 1]} : vector<8x80xf32> to vector<8x20xf32>
    %277 = math.tanh %276 : vector<8x20xf32>
    %278 = vector.extract_strided_slice %259 {offsets = [0, 60], sizes = [8, 20], strides = [1, 1]} : vector<8x80xf32> to vector<8x20xf32>
    %cst_87 = arith.constant 0.000000e+00 : f32
    %279 = vector.broadcast %cst_87 : f32 to vector<8x20xf32>
    %280 = arith.subf %279, %278 : vector<8x20xf32>
    %281 = math.exp %280 : vector<8x20xf32>
    %cst_88 = arith.constant 1.000000e+00 : f32
    %282 = vector.broadcast %cst_88 : f32 to vector<8x20xf32>
    %283 = arith.addf %282, %281 : vector<8x20xf32>
    %cst_89 = arith.constant 1.000000e+00 : f32
    %284 = vector.broadcast %cst_89 : f32 to vector<8x20xf32>
    %285 = arith.divf %284, %283 : vector<8x20xf32>
    %286 = arith.mulf %275, %253 : vector<8x20xf32>
    %287 = arith.mulf %267, %277 : vector<8x20xf32>
    %288 = arith.addf %286, %287 : vector<8x20xf32>
    %289 = math.tanh %288 : vector<8x20xf32>
    %290 = arith.mulf %285, %289 : vector<8x20xf32>
    %291 = vector.shape_cast %45 : vector<8x20xf32> to vector<1x8x20xf32>
    %292 = vector.shape_cast %80 : vector<8x20xf32> to vector<1x8x20xf32>
    %293 = vector.shape_cast %115 : vector<8x20xf32> to vector<1x8x20xf32>
    %294 = vector.shape_cast %150 : vector<8x20xf32> to vector<1x8x20xf32>
    %295 = vector.shape_cast %185 : vector<8x20xf32> to vector<1x8x20xf32>
    %296 = vector.shape_cast %220 : vector<8x20xf32> to vector<1x8x20xf32>
    %297 = vector.shape_cast %255 : vector<8x20xf32> to vector<1x8x20xf32>
    %298 = vector.shape_cast %290 : vector<8x20xf32> to vector<1x8x20xf32>
    %299 = tpu.concatenate %291, %292, %293, %294, %295, %296, %297, %298 in 0 : vector<1x8x20xf32>, vector<1x8x20xf32>, vector<1x8x20xf32>, vector<1x8x20xf32>, vector<1x8x20xf32>, vector<1x8x20xf32>, vector<1x8x20xf32>, vector<1x8x20xf32> -> vector<8x8x20xf32>
    %c0_90 = arith.constant 0 : index
    %c0_91 = arith.constant 0 : index
    %300 = vector.load %arg5[%c0_90, %c0_91] : memref<20x80xf32, #tpu.memory_space<vmem>>, vector<20x80xf32>
    %c0_92 = arith.constant 0 : index
    %c0_93 = arith.constant 0 : index
    %301 = vector.load %arg6[%c0_92, %c0_93] : memref<20x80xf32, #tpu.memory_space<vmem>>, vector<20x80xf32>
    %c0_94 = arith.constant 0 : index
    %c0_95 = arith.constant 0 : index
    %302 = vector.load %arg7[%c0_94, %c0_95] : memref<1x80xf32, #tpu.memory_space<vmem>>, vector<1x80xf32>
    %303 = vector.shape_cast %299 : vector<8x8x20xf32> to vector<64x20xf32>
    %cst_96 = arith.constant dense<0.000000e+00> : vector<64x80xf32>
    %304 = tpu.matmul %303, %300, %cst_96 {dimension_numbers = #tpu.dot_dimension_numbers<[1], [0], [0], [1], [0, 0, 1, 1], [], []>} : vector<64x20xf32>, vector<20x80xf32>, vector<64x80xf32> -> vector<64x80xf32>
    %305 = vector.broadcast %302 : vector<1x80xf32> to vector<64x80xf32>
    %306 = arith.addf %304, %305 : vector<64x80xf32>
    %307 = vector.shape_cast %306 : vector<64x80xf32> to vector<8x8x80xf32>
    %cst_97 = arith.constant 0.000000e+00 : f32
    %308 = vector.broadcast %cst_97 : f32 to vector<8x20xf32>
    %cst_98 = arith.constant 0.000000e+00 : f32
    %309 = vector.broadcast %cst_98 : f32 to vector<8x20xf32>
    %310 = vector.extract_strided_slice %307 {offsets = [0, 0, 0], sizes = [1, 8, 80], strides = [1, 1, 1]} : vector<8x8x80xf32> to vector<1x8x80xf32>
    %311 = vector.shape_cast %310 : vector<1x8x80xf32> to vector<8x80xf32>
    %cst_99 = arith.constant dense<0.000000e+00> : vector<8x80xf32>
    %312 = tpu.matmul %308, %301, %cst_99 {dimension_numbers = #tpu.dot_dimension_numbers<[1], [0], [0], [1], [0, 0, 1, 1], [], []>} : vector<8x20xf32>, vector<20x80xf32>, vector<8x80xf32> -> vector<8x80xf32>
    %313 = arith.addf %311, %312 : vector<8x80xf32>
    %314 = vector.extract_strided_slice %313 {offsets = [0, 0], sizes = [8, 20], strides = [1, 1]} : vector<8x80xf32> to vector<8x20xf32>
    %cst_100 = arith.constant 0.000000e+00 : f32
    %315 = vector.broadcast %cst_100 : f32 to vector<8x20xf32>
    %316 = arith.subf %315, %314 : vector<8x20xf32>
    %317 = math.exp %316 : vector<8x20xf32>
    %cst_101 = arith.constant 1.000000e+00 : f32
    %318 = vector.broadcast %cst_101 : f32 to vector<8x20xf32>
    %319 = arith.addf %318, %317 : vector<8x20xf32>
    %cst_102 = arith.constant 1.000000e+00 : f32
    %320 = vector.broadcast %cst_102 : f32 to vector<8x20xf32>
    %321 = arith.divf %320, %319 : vector<8x20xf32>
    %322 = vector.extract_strided_slice %313 {offsets = [0, 20], sizes = [8, 20], strides = [1, 1]} : vector<8x80xf32> to vector<8x20xf32>
    %cst_103 = arith.constant 0.000000e+00 : f32
    %323 = vector.broadcast %cst_103 : f32 to vector<8x20xf32>
    %324 = arith.subf %323, %322 : vector<8x20xf32>
    %325 = math.exp %324 : vector<8x20xf32>
    %cst_104 = arith.constant 1.000000e+00 : f32
    %326 = vector.broadcast %cst_104 : f32 to vector<8x20xf32>
    %327 = arith.addf %326, %325 : vector<8x20xf32>
    %cst_105 = arith.constant 1.000000e+00 : f32
    %328 = vector.broadcast %cst_105 : f32 to vector<8x20xf32>
    %329 = arith.divf %328, %327 : vector<8x20xf32>
    %330 = vector.extract_strided_slice %313 {offsets = [0, 40], sizes = [8, 20], strides = [1, 1]} : vector<8x80xf32> to vector<8x20xf32>
    %331 = math.tanh %330 : vector<8x20xf32>
    %332 = vector.extract_strided_slice %313 {offsets = [0, 60], sizes = [8, 20], strides = [1, 1]} : vector<8x80xf32> to vector<8x20xf32>
    %cst_106 = arith.constant 0.000000e+00 : f32
    %333 = vector.broadcast %cst_106 : f32 to vector<8x20xf32>
    %334 = arith.subf %333, %332 : vector<8x20xf32>
    %335 = math.exp %334 : vector<8x20xf32>
    %cst_107 = arith.constant 1.000000e+00 : f32
    %336 = vector.broadcast %cst_107 : f32 to vector<8x20xf32>
    %337 = arith.addf %336, %335 : vector<8x20xf32>
    %cst_108 = arith.constant 1.000000e+00 : f32
    %338 = vector.broadcast %cst_108 : f32 to vector<8x20xf32>
    %339 = arith.divf %338, %337 : vector<8x20xf32>
    %340 = arith.mulf %329, %309 : vector<8x20xf32>
    %341 = arith.mulf %321, %331 : vector<8x20xf32>
    %342 = arith.addf %340, %341 : vector<8x20xf32>
    %343 = math.tanh %342 : vector<8x20xf32>
    %344 = arith.mulf %339, %343 : vector<8x20xf32>
    %345 = vector.extract_strided_slice %307 {offsets = [1, 0, 0], sizes = [1, 8, 80], strides = [1, 1, 1]} : vector<8x8x80xf32> to vector<1x8x80xf32>
    %346 = vector.shape_cast %345 : vector<1x8x80xf32> to vector<8x80xf32>
    %cst_109 = arith.constant dense<0.000000e+00> : vector<8x80xf32>
    %347 = tpu.matmul %344, %301, %cst_109 {dimension_numbers = #tpu.dot_dimension_numbers<[1], [0], [0], [1], [0, 0, 1, 1], [], []>} : vector<8x20xf32>, vector<20x80xf32>, vector<8x80xf32> -> vector<8x80xf32>
    %348 = arith.addf %346, %347 : vector<8x80xf32>
    %349 = vector.extract_strided_slice %348 {offsets = [0, 0], sizes = [8, 20], strides = [1, 1]} : vector<8x80xf32> to vector<8x20xf32>
    %cst_110 = arith.constant 0.000000e+00 : f32
    %350 = vector.broadcast %cst_110 : f32 to vector<8x20xf32>
    %351 = arith.subf %350, %349 : vector<8x20xf32>
    %352 = math.exp %351 : vector<8x20xf32>
    %cst_111 = arith.constant 1.000000e+00 : f32
    %353 = vector.broadcast %cst_111 : f32 to vector<8x20xf32>
    %354 = arith.addf %353, %352 : vector<8x20xf32>
    %cst_112 = arith.constant 1.000000e+00 : f32
    %355 = vector.broadcast %cst_112 : f32 to vector<8x20xf32>
    %356 = arith.divf %355, %354 : vector<8x20xf32>
    %357 = vector.extract_strided_slice %348 {offsets = [0, 20], sizes = [8, 20], strides = [1, 1]} : vector<8x80xf32> to vector<8x20xf32>
    %cst_113 = arith.constant 0.000000e+00 : f32
    %358 = vector.broadcast %cst_113 : f32 to vector<8x20xf32>
    %359 = arith.subf %358, %357 : vector<8x20xf32>
    %360 = math.exp %359 : vector<8x20xf32>
    %cst_114 = arith.constant 1.000000e+00 : f32
    %361 = vector.broadcast %cst_114 : f32 to vector<8x20xf32>
    %362 = arith.addf %361, %360 : vector<8x20xf32>
    %cst_115 = arith.constant 1.000000e+00 : f32
    %363 = vector.broadcast %cst_115 : f32 to vector<8x20xf32>
    %364 = arith.divf %363, %362 : vector<8x20xf32>
    %365 = vector.extract_strided_slice %348 {offsets = [0, 40], sizes = [8, 20], strides = [1, 1]} : vector<8x80xf32> to vector<8x20xf32>
    %366 = math.tanh %365 : vector<8x20xf32>
    %367 = vector.extract_strided_slice %348 {offsets = [0, 60], sizes = [8, 20], strides = [1, 1]} : vector<8x80xf32> to vector<8x20xf32>
    %cst_116 = arith.constant 0.000000e+00 : f32
    %368 = vector.broadcast %cst_116 : f32 to vector<8x20xf32>
    %369 = arith.subf %368, %367 : vector<8x20xf32>
    %370 = math.exp %369 : vector<8x20xf32>
    %cst_117 = arith.constant 1.000000e+00 : f32
    %371 = vector.broadcast %cst_117 : f32 to vector<8x20xf32>
    %372 = arith.addf %371, %370 : vector<8x20xf32>
    %cst_118 = arith.constant 1.000000e+00 : f32
    %373 = vector.broadcast %cst_118 : f32 to vector<8x20xf32>
    %374 = arith.divf %373, %372 : vector<8x20xf32>
    %375 = arith.mulf %364, %342 : vector<8x20xf32>
    %376 = arith.mulf %356, %366 : vector<8x20xf32>
    %377 = arith.addf %375, %376 : vector<8x20xf32>
    %378 = math.tanh %377 : vector<8x20xf32>
    %379 = arith.mulf %374, %378 : vector<8x20xf32>
    %380 = vector.extract_strided_slice %307 {offsets = [2, 0, 0], sizes = [1, 8, 80], strides = [1, 1, 1]} : vector<8x8x80xf32> to vector<1x8x80xf32>
    %381 = vector.shape_cast %380 : vector<1x8x80xf32> to vector<8x80xf32>
    %cst_119 = arith.constant dense<0.000000e+00> : vector<8x80xf32>
    %382 = tpu.matmul %379, %301, %cst_119 {dimension_numbers = #tpu.dot_dimension_numbers<[1], [0], [0], [1], [0, 0, 1, 1], [], []>} : vector<8x20xf32>, vector<20x80xf32>, vector<8x80xf32> -> vector<8x80xf32>
    %383 = arith.addf %381, %382 : vector<8x80xf32>
    %384 = vector.extract_strided_slice %383 {offsets = [0, 0], sizes = [8, 20], strides = [1, 1]} : vector<8x80xf32> to vector<8x20xf32>
    %cst_120 = arith.constant 0.000000e+00 : f32
    %385 = vector.broadcast %cst_120 : f32 to vector<8x20xf32>
    %386 = arith.subf %385, %384 : vector<8x20xf32>
    %387 = math.exp %386 : vector<8x20xf32>
    %cst_121 = arith.constant 1.000000e+00 : f32
    %388 = vector.broadcast %cst_121 : f32 to vector<8x20xf32>
    %389 = arith.addf %388, %387 : vector<8x20xf32>
    %cst_122 = arith.constant 1.000000e+00 : f32
    %390 = vector.broadcast %cst_122 : f32 to vector<8x20xf32>
    %391 = arith.divf %390, %389 : vector<8x20xf32>
    %392 = vector.extract_strided_slice %383 {offsets = [0, 20], sizes = [8, 20], strides = [1, 1]} : vector<8x80xf32> to vector<8x20xf32>
    %cst_123 = arith.constant 0.000000e+00 : f32
    %393 = vector.broadcast %cst_123 : f32 to vector<8x20xf32>
    %394 = arith.subf %393, %392 : vector<8x20xf32>
    %395 = math.exp %394 : vector<8x20xf32>
    %cst_124 = arith.constant 1.000000e+00 : f32
    %396 = vector.broadcast %cst_124 : f32 to vector<8x20xf32>
    %397 = arith.addf %396, %395 : vector<8x20xf32>
    %cst_125 = arith.constant 1.000000e+00 : f32
    %398 = vector.broadcast %cst_125 : f32 to vector<8x20xf32>
    %399 = arith.divf %398, %397 : vector<8x20xf32>
    %400 = vector.extract_strided_slice %383 {offsets = [0, 40], sizes = [8, 20], strides = [1, 1]} : vector<8x80xf32> to vector<8x20xf32>
    %401 = math.tanh %400 : vector<8x20xf32>
    %402 = vector.extract_strided_slice %383 {offsets = [0, 60], sizes = [8, 20], strides = [1, 1]} : vector<8x80xf32> to vector<8x20xf32>
    %cst_126 = arith.constant 0.000000e+00 : f32
    %403 = vector.broadcast %cst_126 : f32 to vector<8x20xf32>
    %404 = arith.subf %403, %402 : vector<8x20xf32>
    %405 = math.exp %404 : vector<8x20xf32>
    %cst_127 = arith.constant 1.000000e+00 : f32
    %406 = vector.broadcast %cst_127 : f32 to vector<8x20xf32>
    %407 = arith.addf %406, %405 : vector<8x20xf32>
    %cst_128 = arith.constant 1.000000e+00 : f32
    %408 = vector.broadcast %cst_128 : f32 to vector<8x20xf32>
    %409 = arith.divf %408, %407 : vector<8x20xf32>
    %410 = arith.mulf %399, %377 : vector<8x20xf32>
    %411 = arith.mulf %391, %401 : vector<8x20xf32>
    %412 = arith.addf %410, %411 : vector<8x20xf32>
    %413 = math.tanh %412 : vector<8x20xf32>
    %414 = arith.mulf %409, %413 : vector<8x20xf32>
    %415 = vector.extract_strided_slice %307 {offsets = [3, 0, 0], sizes = [1, 8, 80], strides = [1, 1, 1]} : vector<8x8x80xf32> to vector<1x8x80xf32>
    %416 = vector.shape_cast %415 : vector<1x8x80xf32> to vector<8x80xf32>
    %cst_129 = arith.constant dense<0.000000e+00> : vector<8x80xf32>
    %417 = tpu.matmul %414, %301, %cst_129 {dimension_numbers = #tpu.dot_dimension_numbers<[1], [0], [0], [1], [0, 0, 1, 1], [], []>} : vector<8x20xf32>, vector<20x80xf32>, vector<8x80xf32> -> vector<8x80xf32>
    %418 = arith.addf %416, %417 : vector<8x80xf32>
    %419 = vector.extract_strided_slice %418 {offsets = [0, 0], sizes = [8, 20], strides = [1, 1]} : vector<8x80xf32> to vector<8x20xf32>
    %cst_130 = arith.constant 0.000000e+00 : f32
    %420 = vector.broadcast %cst_130 : f32 to vector<8x20xf32>
    %421 = arith.subf %420, %419 : vector<8x20xf32>
    %422 = math.exp %421 : vector<8x20xf32>
    %cst_131 = arith.constant 1.000000e+00 : f32
    %423 = vector.broadcast %cst_131 : f32 to vector<8x20xf32>
    %424 = arith.addf %423, %422 : vector<8x20xf32>
    %cst_132 = arith.constant 1.000000e+00 : f32
    %425 = vector.broadcast %cst_132 : f32 to vector<8x20xf32>
    %426 = arith.divf %425, %424 : vector<8x20xf32>
    %427 = vector.extract_strided_slice %418 {offsets = [0, 20], sizes = [8, 20], strides = [1, 1]} : vector<8x80xf32> to vector<8x20xf32>
    %cst_133 = arith.constant 0.000000e+00 : f32
    %428 = vector.broadcast %cst_133 : f32 to vector<8x20xf32>
    %429 = arith.subf %428, %427 : vector<8x20xf32>
    %430 = math.exp %429 : vector<8x20xf32>
    %cst_134 = arith.constant 1.000000e+00 : f32
    %431 = vector.broadcast %cst_134 : f32 to vector<8x20xf32>
    %432 = arith.addf %431, %430 : vector<8x20xf32>
    %cst_135 = arith.constant 1.000000e+00 : f32
    %433 = vector.broadcast %cst_135 : f32 to vector<8x20xf32>
    %434 = arith.divf %433, %432 : vector<8x20xf32>
    %435 = vector.extract_strided_slice %418 {offsets = [0, 40], sizes = [8, 20], strides = [1, 1]} : vector<8x80xf32> to vector<8x20xf32>
    %436 = math.tanh %435 : vector<8x20xf32>
    %437 = vector.extract_strided_slice %418 {offsets = [0, 60], sizes = [8, 20], strides = [1, 1]} : vector<8x80xf32> to vector<8x20xf32>
    %cst_136 = arith.constant 0.000000e+00 : f32
    %438 = vector.broadcast %cst_136 : f32 to vector<8x20xf32>
    %439 = arith.subf %438, %437 : vector<8x20xf32>
    %440 = math.exp %439 : vector<8x20xf32>
    %cst_137 = arith.constant 1.000000e+00 : f32
    %441 = vector.broadcast %cst_137 : f32 to vector<8x20xf32>
    %442 = arith.addf %441, %440 : vector<8x20xf32>
    %cst_138 = arith.constant 1.000000e+00 : f32
    %443 = vector.broadcast %cst_138 : f32 to vector<8x20xf32>
    %444 = arith.divf %443, %442 : vector<8x20xf32>
    %445 = arith.mulf %434, %412 : vector<8x20xf32>
    %446 = arith.mulf %426, %436 : vector<8x20xf32>
    %447 = arith.addf %445, %446 : vector<8x20xf32>
    %448 = math.tanh %447 : vector<8x20xf32>
    %449 = arith.mulf %444, %448 : vector<8x20xf32>
    %450 = vector.extract_strided_slice %307 {offsets = [4, 0, 0], sizes = [1, 8, 80], strides = [1, 1, 1]} : vector<8x8x80xf32> to vector<1x8x80xf32>
    %451 = vector.shape_cast %450 : vector<1x8x80xf32> to vector<8x80xf32>
    %cst_139 = arith.constant dense<0.000000e+00> : vector<8x80xf32>
    %452 = tpu.matmul %449, %301, %cst_139 {dimension_numbers = #tpu.dot_dimension_numbers<[1], [0], [0], [1], [0, 0, 1, 1], [], []>} : vector<8x20xf32>, vector<20x80xf32>, vector<8x80xf32> -> vector<8x80xf32>
    %453 = arith.addf %451, %452 : vector<8x80xf32>
    %454 = vector.extract_strided_slice %453 {offsets = [0, 0], sizes = [8, 20], strides = [1, 1]} : vector<8x80xf32> to vector<8x20xf32>
    %cst_140 = arith.constant 0.000000e+00 : f32
    %455 = vector.broadcast %cst_140 : f32 to vector<8x20xf32>
    %456 = arith.subf %455, %454 : vector<8x20xf32>
    %457 = math.exp %456 : vector<8x20xf32>
    %cst_141 = arith.constant 1.000000e+00 : f32
    %458 = vector.broadcast %cst_141 : f32 to vector<8x20xf32>
    %459 = arith.addf %458, %457 : vector<8x20xf32>
    %cst_142 = arith.constant 1.000000e+00 : f32
    %460 = vector.broadcast %cst_142 : f32 to vector<8x20xf32>
    %461 = arith.divf %460, %459 : vector<8x20xf32>
    %462 = vector.extract_strided_slice %453 {offsets = [0, 20], sizes = [8, 20], strides = [1, 1]} : vector<8x80xf32> to vector<8x20xf32>
    %cst_143 = arith.constant 0.000000e+00 : f32
    %463 = vector.broadcast %cst_143 : f32 to vector<8x20xf32>
    %464 = arith.subf %463, %462 : vector<8x20xf32>
    %465 = math.exp %464 : vector<8x20xf32>
    %cst_144 = arith.constant 1.000000e+00 : f32
    %466 = vector.broadcast %cst_144 : f32 to vector<8x20xf32>
    %467 = arith.addf %466, %465 : vector<8x20xf32>
    %cst_145 = arith.constant 1.000000e+00 : f32
    %468 = vector.broadcast %cst_145 : f32 to vector<8x20xf32>
    %469 = arith.divf %468, %467 : vector<8x20xf32>
    %470 = vector.extract_strided_slice %453 {offsets = [0, 40], sizes = [8, 20], strides = [1, 1]} : vector<8x80xf32> to vector<8x20xf32>
    %471 = math.tanh %470 : vector<8x20xf32>
    %472 = vector.extract_strided_slice %453 {offsets = [0, 60], sizes = [8, 20], strides = [1, 1]} : vector<8x80xf32> to vector<8x20xf32>
    %cst_146 = arith.constant 0.000000e+00 : f32
    %473 = vector.broadcast %cst_146 : f32 to vector<8x20xf32>
    %474 = arith.subf %473, %472 : vector<8x20xf32>
    %475 = math.exp %474 : vector<8x20xf32>
    %cst_147 = arith.constant 1.000000e+00 : f32
    %476 = vector.broadcast %cst_147 : f32 to vector<8x20xf32>
    %477 = arith.addf %476, %475 : vector<8x20xf32>
    %cst_148 = arith.constant 1.000000e+00 : f32
    %478 = vector.broadcast %cst_148 : f32 to vector<8x20xf32>
    %479 = arith.divf %478, %477 : vector<8x20xf32>
    %480 = arith.mulf %469, %447 : vector<8x20xf32>
    %481 = arith.mulf %461, %471 : vector<8x20xf32>
    %482 = arith.addf %480, %481 : vector<8x20xf32>
    %483 = math.tanh %482 : vector<8x20xf32>
    %484 = arith.mulf %479, %483 : vector<8x20xf32>
    %485 = vector.extract_strided_slice %307 {offsets = [5, 0, 0], sizes = [1, 8, 80], strides = [1, 1, 1]} : vector<8x8x80xf32> to vector<1x8x80xf32>
    %486 = vector.shape_cast %485 : vector<1x8x80xf32> to vector<8x80xf32>
    %cst_149 = arith.constant dense<0.000000e+00> : vector<8x80xf32>
    %487 = tpu.matmul %484, %301, %cst_149 {dimension_numbers = #tpu.dot_dimension_numbers<[1], [0], [0], [1], [0, 0, 1, 1], [], []>} : vector<8x20xf32>, vector<20x80xf32>, vector<8x80xf32> -> vector<8x80xf32>
    %488 = arith.addf %486, %487 : vector<8x80xf32>
    %489 = vector.extract_strided_slice %488 {offsets = [0, 0], sizes = [8, 20], strides = [1, 1]} : vector<8x80xf32> to vector<8x20xf32>
    %cst_150 = arith.constant 0.000000e+00 : f32
    %490 = vector.broadcast %cst_150 : f32 to vector<8x20xf32>
    %491 = arith.subf %490, %489 : vector<8x20xf32>
    %492 = math.exp %491 : vector<8x20xf32>
    %cst_151 = arith.constant 1.000000e+00 : f32
    %493 = vector.broadcast %cst_151 : f32 to vector<8x20xf32>
    %494 = arith.addf %493, %492 : vector<8x20xf32>
    %cst_152 = arith.constant 1.000000e+00 : f32
    %495 = vector.broadcast %cst_152 : f32 to vector<8x20xf32>
    %496 = arith.divf %495, %494 : vector<8x20xf32>
    %497 = vector.extract_strided_slice %488 {offsets = [0, 20], sizes = [8, 20], strides = [1, 1]} : vector<8x80xf32> to vector<8x20xf32>
    %cst_153 = arith.constant 0.000000e+00 : f32
    %498 = vector.broadcast %cst_153 : f32 to vector<8x20xf32>
    %499 = arith.subf %498, %497 : vector<8x20xf32>
    %500 = math.exp %499 : vector<8x20xf32>
    %cst_154 = arith.constant 1.000000e+00 : f32
    %501 = vector.broadcast %cst_154 : f32 to vector<8x20xf32>
    %502 = arith.addf %501, %500 : vector<8x20xf32>
    %cst_155 = arith.constant 1.000000e+00 : f32
    %503 = vector.broadcast %cst_155 : f32 to vector<8x20xf32>
    %504 = arith.divf %503, %502 : vector<8x20xf32>
    %505 = vector.extract_strided_slice %488 {offsets = [0, 40], sizes = [8, 20], strides = [1, 1]} : vector<8x80xf32> to vector<8x20xf32>
    %506 = math.tanh %505 : vector<8x20xf32>
    %507 = vector.extract_strided_slice %488 {offsets = [0, 60], sizes = [8, 20], strides = [1, 1]} : vector<8x80xf32> to vector<8x20xf32>
    %cst_156 = arith.constant 0.000000e+00 : f32
    %508 = vector.broadcast %cst_156 : f32 to vector<8x20xf32>
    %509 = arith.subf %508, %507 : vector<8x20xf32>
    %510 = math.exp %509 : vector<8x20xf32>
    %cst_157 = arith.constant 1.000000e+00 : f32
    %511 = vector.broadcast %cst_157 : f32 to vector<8x20xf32>
    %512 = arith.addf %511, %510 : vector<8x20xf32>
    %cst_158 = arith.constant 1.000000e+00 : f32
    %513 = vector.broadcast %cst_158 : f32 to vector<8x20xf32>
    %514 = arith.divf %513, %512 : vector<8x20xf32>
    %515 = arith.mulf %504, %482 : vector<8x20xf32>
    %516 = arith.mulf %496, %506 : vector<8x20xf32>
    %517 = arith.addf %515, %516 : vector<8x20xf32>
    %518 = math.tanh %517 : vector<8x20xf32>
    %519 = arith.mulf %514, %518 : vector<8x20xf32>
    %520 = vector.extract_strided_slice %307 {offsets = [6, 0, 0], sizes = [1, 8, 80], strides = [1, 1, 1]} : vector<8x8x80xf32> to vector<1x8x80xf32>
    %521 = vector.shape_cast %520 : vector<1x8x80xf32> to vector<8x80xf32>
    %cst_159 = arith.constant dense<0.000000e+00> : vector<8x80xf32>
    %522 = tpu.matmul %519, %301, %cst_159 {dimension_numbers = #tpu.dot_dimension_numbers<[1], [0], [0], [1], [0, 0, 1, 1], [], []>} : vector<8x20xf32>, vector<20x80xf32>, vector<8x80xf32> -> vector<8x80xf32>
    %523 = arith.addf %521, %522 : vector<8x80xf32>
    %524 = vector.extract_strided_slice %523 {offsets = [0, 0], sizes = [8, 20], strides = [1, 1]} : vector<8x80xf32> to vector<8x20xf32>
    %cst_160 = arith.constant 0.000000e+00 : f32
    %525 = vector.broadcast %cst_160 : f32 to vector<8x20xf32>
    %526 = arith.subf %525, %524 : vector<8x20xf32>
    %527 = math.exp %526 : vector<8x20xf32>
    %cst_161 = arith.constant 1.000000e+00 : f32
    %528 = vector.broadcast %cst_161 : f32 to vector<8x20xf32>
    %529 = arith.addf %528, %527 : vector<8x20xf32>
    %cst_162 = arith.constant 1.000000e+00 : f32
    %530 = vector.broadcast %cst_162 : f32 to vector<8x20xf32>
    %531 = arith.divf %530, %529 : vector<8x20xf32>
    %532 = vector.extract_strided_slice %523 {offsets = [0, 20], sizes = [8, 20], strides = [1, 1]} : vector<8x80xf32> to vector<8x20xf32>
    %cst_163 = arith.constant 0.000000e+00 : f32
    %533 = vector.broadcast %cst_163 : f32 to vector<8x20xf32>
    %534 = arith.subf %533, %532 : vector<8x20xf32>
    %535 = math.exp %534 : vector<8x20xf32>
    %cst_164 = arith.constant 1.000000e+00 : f32
    %536 = vector.broadcast %cst_164 : f32 to vector<8x20xf32>
    %537 = arith.addf %536, %535 : vector<8x20xf32>
    %cst_165 = arith.constant 1.000000e+00 : f32
    %538 = vector.broadcast %cst_165 : f32 to vector<8x20xf32>
    %539 = arith.divf %538, %537 : vector<8x20xf32>
    %540 = vector.extract_strided_slice %523 {offsets = [0, 40], sizes = [8, 20], strides = [1, 1]} : vector<8x80xf32> to vector<8x20xf32>
    %541 = math.tanh %540 : vector<8x20xf32>
    %542 = vector.extract_strided_slice %523 {offsets = [0, 60], sizes = [8, 20], strides = [1, 1]} : vector<8x80xf32> to vector<8x20xf32>
    %cst_166 = arith.constant 0.000000e+00 : f32
    %543 = vector.broadcast %cst_166 : f32 to vector<8x20xf32>
    %544 = arith.subf %543, %542 : vector<8x20xf32>
    %545 = math.exp %544 : vector<8x20xf32>
    %cst_167 = arith.constant 1.000000e+00 : f32
    %546 = vector.broadcast %cst_167 : f32 to vector<8x20xf32>
    %547 = arith.addf %546, %545 : vector<8x20xf32>
    %cst_168 = arith.constant 1.000000e+00 : f32
    %548 = vector.broadcast %cst_168 : f32 to vector<8x20xf32>
    %549 = arith.divf %548, %547 : vector<8x20xf32>
    %550 = arith.mulf %539, %517 : vector<8x20xf32>
    %551 = arith.mulf %531, %541 : vector<8x20xf32>
    %552 = arith.addf %550, %551 : vector<8x20xf32>
    %553 = math.tanh %552 : vector<8x20xf32>
    %554 = arith.mulf %549, %553 : vector<8x20xf32>
    %555 = vector.extract_strided_slice %307 {offsets = [7, 0, 0], sizes = [1, 8, 80], strides = [1, 1, 1]} : vector<8x8x80xf32> to vector<1x8x80xf32>
    %556 = vector.shape_cast %555 : vector<1x8x80xf32> to vector<8x80xf32>
    %cst_169 = arith.constant dense<0.000000e+00> : vector<8x80xf32>
    %557 = tpu.matmul %554, %301, %cst_169 {dimension_numbers = #tpu.dot_dimension_numbers<[1], [0], [0], [1], [0, 0, 1, 1], [], []>} : vector<8x20xf32>, vector<20x80xf32>, vector<8x80xf32> -> vector<8x80xf32>
    %558 = arith.addf %556, %557 : vector<8x80xf32>
    %559 = vector.extract_strided_slice %558 {offsets = [0, 0], sizes = [8, 20], strides = [1, 1]} : vector<8x80xf32> to vector<8x20xf32>
    %cst_170 = arith.constant 0.000000e+00 : f32
    %560 = vector.broadcast %cst_170 : f32 to vector<8x20xf32>
    %561 = arith.subf %560, %559 : vector<8x20xf32>
    %562 = math.exp %561 : vector<8x20xf32>
    %cst_171 = arith.constant 1.000000e+00 : f32
    %563 = vector.broadcast %cst_171 : f32 to vector<8x20xf32>
    %564 = arith.addf %563, %562 : vector<8x20xf32>
    %cst_172 = arith.constant 1.000000e+00 : f32
    %565 = vector.broadcast %cst_172 : f32 to vector<8x20xf32>
    %566 = arith.divf %565, %564 : vector<8x20xf32>
    %567 = vector.extract_strided_slice %558 {offsets = [0, 20], sizes = [8, 20], strides = [1, 1]} : vector<8x80xf32> to vector<8x20xf32>
    %cst_173 = arith.constant 0.000000e+00 : f32
    %568 = vector.broadcast %cst_173 : f32 to vector<8x20xf32>
    %569 = arith.subf %568, %567 : vector<8x20xf32>
    %570 = math.exp %569 : vector<8x20xf32>
    %cst_174 = arith.constant 1.000000e+00 : f32
    %571 = vector.broadcast %cst_174 : f32 to vector<8x20xf32>
    %572 = arith.addf %571, %570 : vector<8x20xf32>
    %cst_175 = arith.constant 1.000000e+00 : f32
    %573 = vector.broadcast %cst_175 : f32 to vector<8x20xf32>
    %574 = arith.divf %573, %572 : vector<8x20xf32>
    %575 = vector.extract_strided_slice %558 {offsets = [0, 40], sizes = [8, 20], strides = [1, 1]} : vector<8x80xf32> to vector<8x20xf32>
    %576 = math.tanh %575 : vector<8x20xf32>
    %577 = vector.extract_strided_slice %558 {offsets = [0, 60], sizes = [8, 20], strides = [1, 1]} : vector<8x80xf32> to vector<8x20xf32>
    %cst_176 = arith.constant 0.000000e+00 : f32
    %578 = vector.broadcast %cst_176 : f32 to vector<8x20xf32>
    %579 = arith.subf %578, %577 : vector<8x20xf32>
    %580 = math.exp %579 : vector<8x20xf32>
    %cst_177 = arith.constant 1.000000e+00 : f32
    %581 = vector.broadcast %cst_177 : f32 to vector<8x20xf32>
    %582 = arith.addf %581, %580 : vector<8x20xf32>
    %cst_178 = arith.constant 1.000000e+00 : f32
    %583 = vector.broadcast %cst_178 : f32 to vector<8x20xf32>
    %584 = arith.divf %583, %582 : vector<8x20xf32>
    %585 = arith.mulf %574, %552 : vector<8x20xf32>
    %586 = arith.mulf %566, %576 : vector<8x20xf32>
    %587 = arith.addf %585, %586 : vector<8x20xf32>
    %588 = math.tanh %587 : vector<8x20xf32>
    %589 = arith.mulf %584, %588 : vector<8x20xf32>
    %c0_179 = arith.constant 0 : index
    %c0_180 = arith.constant 0 : index
    %590 = vector.load %arg8[%c0_179, %c0_180] : memref<20x2xf32, #tpu.memory_space<vmem>>, vector<20x2xf32>
    %cst_181 = arith.constant dense<0.000000e+00> : vector<8x2xf32>
    %591 = tpu.matmul %589, %590, %cst_181 {dimension_numbers = #tpu.dot_dimension_numbers<[1], [0], [0], [1], [0, 0, 1, 1], [], []>} : vector<8x20xf32>, vector<20x2xf32>, vector<8x2xf32> -> vector<8x2xf32>
    %c0_182 = arith.constant 0 : index
    %c0_183 = arith.constant 0 : index
    %592 = vector.load %arg9[%c0_182, %c0_183] : memref<1x2xf32, #tpu.memory_space<vmem>>, vector<1x2xf32>
    %593 = vector.broadcast %592 : vector<1x2xf32> to vector<8x2xf32>
    %594 = arith.addf %591, %593 : vector<8x2xf32>
    %c0_184 = arith.constant 0 : index
    %c0_185 = arith.constant 0 : index
    %595 = vector.load %arg10[%c0_184, %c0_185] : memref<8x2xf32, #tpu.memory_space<vmem>>, vector<8x2xf32>
    tpu.vector_store %arg10[%c0_184, %c0_185], %594 {strides = array<i32>} : memref<8x2xf32, #tpu.memory_space<vmem>>, vector<8x2xf32>,
    return
  }
  func.func @transform_0(%arg0: i32) -> (i32, i32, i32) {
    %c0_i32 = arith.constant 0 : i32
    %c0_i32_0 = arith.constant 0 : i32
    %c0_i32_1 = arith.constant 0 : i32
    return %c0_i32, %arg0, %c0_i32_0 : i32, i32, i32
  }
  func.func @transform_1(%arg0: i32) -> (i32, i32) {
    %c0_i32 = arith.constant 0 : i32
    %c0_i32_0 = arith.constant 0 : i32
    %c0_i32_1 = arith.constant 0 : i32
    return %c0_i32, %c0_i32_0 : i32, i32
  }
  func.func @transform_2(%arg0: i32) -> (i32, i32) {
    %c0_i32 = arith.constant 0 : i32
    %c0_i32_0 = arith.constant 0 : i32
    %c0_i32_1 = arith.constant 0 : i32
    return %c0_i32, %c0_i32_0 : i32, i32
  }
  func.func @transform_3(%arg0: i32) -> (i32, i32) {
    %c0_i32 = arith.constant 0 : i32
    %c0_i32_0 = arith.constant 0 : i32
    %c0_i32_1 = arith.constant 0 : i32
    return %c0_i32, %c0_i32_0 : i32, i32
  }
  func.func @transform_4(%arg0: i32) -> (i32, i32) {
    %c0_i32 = arith.constant 0 : i32
    %c0_i32_0 = arith.constant 0 : i32
    %c0_i32_1 = arith.constant 0 : i32
    return %c0_i32, %c0_i32_0 : i32, i32
  }
  func.func @transform_5(%arg0: i32) -> (i32, i32) {
    %c0_i32 = arith.constant 0 : i32
    %c0_i32_0 = arith.constant 0 : i32
    %c0_i32_1 = arith.constant 0 : i32
    return %c0_i32, %c0_i32_0 : i32, i32
  }
  func.func @transform_6(%arg0: i32) -> (i32, i32) {
    %c0_i32 = arith.constant 0 : i32
    %c0_i32_0 = arith.constant 0 : i32
    %c0_i32_1 = arith.constant 0 : i32
    return %c0_i32, %c0_i32_0 : i32, i32
  }
  func.func @transform_7(%arg0: i32) -> (i32, i32) {
    %c0_i32 = arith.constant 0 : i32
    %c0_i32_0 = arith.constant 0 : i32
    %c0_i32_1 = arith.constant 0 : i32
    return %c0_i32, %c0_i32_0 : i32, i32
  }
  func.func @transform_8(%arg0: i32) -> (i32, i32) {
    %c0_i32 = arith.constant 0 : i32
    %c0_i32_0 = arith.constant 0 : i32
    %c0_i32_1 = arith.constant 0 : i32
    return %c0_i32, %c0_i32_0 : i32, i32
  }
  func.func @transform_9(%arg0: i32) -> (i32, i32) {
    %c0_i32 = arith.constant 0 : i32
    %c0_i32_0 = arith.constant 0 : i32
    return %arg0, %c0_i32 : i32, i32
  }
}

</mosaic_0001>

<bundles_post_ra>
// kernel: tpu_custom_call.1
= control target key start
LH: loop header
LB: loop body
LE: loop exit
PB: predicated region body
PF: predicated region fallthrough
CT: control target
= control target key end

     0   :  { %14 = vsyncpa [#allocation3], 0  ;;  %s3157_s0 = inlined_call_operand.hbm [shape: f32[8,8,20], index: 0, kind: input, shape index: {}]   ;;  %s3158_s1 = inlined_call_operand.vmem [shape: f32[20,80], index: 1, kind: input, shape index: {}]   ;;  %s3159_s2 = inlined_call_operand.hbm [shape: f32[20,80], index: 2, kind: input, shape index: {}]   ;;  %s3160_s3 = inlined_call_operand.vmem [shape: f32[1,80], index: 3, kind: input, shape index: {}]   ;;  %s3161_s4 = inlined_call_operand.hbm [shape: f32[20,80], index: 4, kind: input, shape index: {}]   ;;  %s3162_s5 = inlined_call_operand.hbm [shape: f32[20,80], index: 5, kind: input, shape index: {}]   ;;  %s3163_s6 = inlined_call_operand.vmem [shape: f32[1,80], index: 6, kind: input, shape index: {}]   ;;  %s3164_s7 = inlined_call_operand.vmem [shape: f32[20,2], index: 7, kind: input, shape index: {}]   ;;  %s3165_s8 = inlined_call_operand.vmem [shape: f32[1,2], index: 8, kind: input, shape index: {}]   ;;  %s3166_s9 = inlined_call_operand.vmem [shape: f32[8,2], index: 9, kind: output, shape index: {}]  }
   0x1   :  { %15 = vsyncpa [#allocation5], 0 }
   0x2   :  { %16 = vsyncpa [#allocation8], 0  ;;  %s2690_s30 = smov [#allocation4]   ;;  %s2691_s11 = smov [#allocation2]  }
   0x3   :  { %s36_s10 = sshll.u32 %s2690_s30, 4  ;;  %s22_s12 = sshll.u32 %s2691_s11, 4  ;;  %s37_s10 = int_to_ptr.vmem [resolvable:$true] %s36_s10  ;;  %s2753_s12 = int_to_ptr.vmem [resolvable:$true] %s22_s12 }
   0x4   :  { %s2596_s15 = scalar_lea.hbm %s3159_s2, 384 }
   0x5   :  { %p2597_p0 = scmp.ne.s32.totalorder %s3159_s2, %s2596_s15  ;;  %p2600_p1 = scmp.lt.u32.totalorder %s2596_s15, %s3159_s2 }
   0x7   :  { %p2602_p2 = pnand %p2600_p1, %p2597_p0 }
   0x9   :  { %2605 = shalt.err (!%p2602_p2)
}
   0xa   :  { %s2606_s20 = scalar_lea.vmem %s37_s10, 384  ;;  %p2611_p4 = scmp.lt.s32.totalorder %s37_s10, %s37_s10 }
   0xb   :  { %p2607_p3 = scmp.ne.s32.totalorder %s37_s10, %s2606_s20  ;;  %p2612_p5 = scmp.lt.s32.totalorder %s2606_s20, %s2606_s20 }
   0xd   :  { %p2613_p6 = por %p2612_p5, %p2611_p4 }
   0xf   :  { %p2614_p7 = pnand %p2613_p6, %p2607_p3 }
  0x11   :  { %2617 = shalt.err (!%p2614_p7)
}
  0x12   :  { %s2692_s21 = smov 128   ;;  %s2693_s22 = smov 8  }
  0x13   :  { %42 = dma.hbm_to_vmem [thread:$0]  %s3159_s2, 384, %s37_s10, [#allocation5], %s2692_s21, %s2692_s21, %s2693_s22  }
  0x14   :  { %s2618_s27 = scalar_lea.hbm %s3157_s0, 1024 }
  0x15   :  { %p2619_p8 = scmp.ne.s32.totalorder %s3157_s0, %s2618_s27  ;;  %p2622_p9 = scmp.lt.u32.totalorder %s2618_s27, %s3157_s0 }
  0x17   :  { %p2624_p10 = pnand %p2622_p9, %p2619_p8 }
  0x19   :  { %2627 = shalt.err (!%p2624_p10)
}
  0x1a   :  { %s2628_s13 = scalar_lea.vmem %s2753_s12, 1024  ;;  %p2633_p12 = scmp.lt.s32.totalorder %s2753_s12, %s2753_s12 }
  0x1b   :  { %p2629_p11 = scmp.ne.s32.totalorder %s2753_s12, %s2628_s13  ;;  %p2634_p13 = scmp.lt.s32.totalorder %s2628_s13, %s2628_s13 }
  0x1d   :  { %p2635_p0 = por %p2634_p13, %p2633_p12 }
  0x1f   :  { %p2636_p1 = pnand %p2635_p0, %p2629_p11 }
  0x21   :  { %2639 = shalt.err (!%p2636_p1)
}
  0x22   :  { %28 = dma.hbm_to_vmem [thread:$0]  %s3157_s0, 1024, %s2753_s12, [#allocation3], %s2692_s21, %s2692_s21, %s2693_s22  }
  0x23   :  { %s2694_s14 = smov [#allocation6]   ;;  %s2695_s16 = smov [#allocation7]  }
  0x24   :  { %s50_s15 = sshll.u32 %s2694_s14, 4  ;;  %s62_s17 = sshll.u32 %s2695_s16, 4  ;;  %s51_s15 = int_to_ptr.vmem [resolvable:$true] %s50_s15  ;;  %s2790_s17 = int_to_ptr.vmem [resolvable:$true] %s62_s17 }
  0x25   :  { %s2640_s20 = scalar_lea.hbm %s3161_s4, 384 }
  0x26   :  { %p2641_p2 = scmp.ne.s32.totalorder %s3161_s4, %s2640_s20  ;;  %p2644_p3 = scmp.lt.u32.totalorder %s2640_s20, %s3161_s4 }
  0x28   :  { %p2646_p4 = pnand %p2644_p3, %p2641_p2 }
  0x2a   :  { %2649 = shalt.err (!%p2646_p4)
}
  0x2b   :  { %s2650_s0 = scalar_lea.vmem %s51_s15, 384  ;;  %p2655_p6 = scmp.lt.s32.totalorder %s51_s15, %s51_s15 }
  0x2c   :  { %p2651_p5 = scmp.ne.s32.totalorder %s51_s15, %s2650_s0  ;;  %p2656_p7 = scmp.lt.s32.totalorder %s2650_s0, %s2650_s0 }
  0x2e   :  { %p2657_p8 = por %p2656_p7, %p2655_p6 }
  0x30   :  { %p2658_p9 = pnand %p2657_p8, %p2651_p5 }
  0x32   :  { %2661 = shalt.err (!%p2658_p9)
}
  0x33   :  { %56 = dma.hbm_to_vmem [thread:$0]  %s3161_s4, 384, %s51_s15, [#allocation5], %s2692_s21, %s2692_s21, %s2693_s22  }
  0x34   :  { %s2662_s30 = scalar_lea.hbm %s3162_s5, 384 }
  0x35   :  { %p2663_p10 = scmp.ne.s32.totalorder %s3162_s5, %s2662_s30  ;;  %p2666_p11 = scmp.lt.u32.totalorder %s2662_s30, %s3162_s5 }
  0x37   :  { %p2668_p12 = pnand %p2666_p11, %p2663_p10 }
  0x39   :  { %2671 = shalt.err (!%p2668_p12)
}
  0x3a   :  { %s2672_s14 = scalar_lea.vmem %s2790_s17, 384  ;;  %p2677_p0 = scmp.lt.s32.totalorder %s2790_s17, %s2790_s17 }
  0x3b   :  { %p2673_p13 = scmp.ne.s32.totalorder %s2790_s17, %s2672_s14  ;;  %p2678_p1 = scmp.lt.s32.totalorder %s2672_s14, %s2672_s14 }
  0x3d   :  { %p2679_p2 = por %p2678_p1, %p2677_p0 }
  0x3f   :  { %p2680_p3 = pnand %p2679_p2, %p2673_p13 }
  0x41   :  { %2683 = shalt.err (!%p2680_p3)
}
  0x42   :  { %68 = dma.hbm_to_vmem [thread:$0]  %s3162_s5, 384, %s2790_s17, [#allocation8], %s2692_s21, %s2692_s21, %s2693_s22  }
  0x43   :  { %2684 = dma.done.wait [#allocation3], 1024  }
  0x44   :  { %2685 = vsyncadd [#allocation3], 4294966272 }
  0x45   :  { %2686 = dma.done.wait [#allocation5], 768  }
  0x46   :  { %2687 = vsyncadd [#allocation5], 4294966528 }
  0x47   :  { %2688 = dma.done.wait [#allocation8], 384  }
  0x48   :  { %2689 = vsyncadd [#allocation8], 4294966912  ;;  %v2696_v0 = vmov 0.0|0.0   ;;  %vm2697_vm0 = vmmov 0   ;;  %v2698_v1 = vmov 0.0   ;;  %vm108_vm1 = vcmask 162816  }
  0x49   :  { %2400 = vmatprep.subr.bf16.mxu1 %v2696_v0  ;;  %2231 = vmatprep.mubr.msk.f32.mxu1 %vm2697_vm0, %v2698_v1  ;;  %v95_v2 = vld [vmem:[%s3158_s1] sm:$0xff]  ;;  %v96_v3 = vld [vmem:[%s3158_s1 + $0x8] sm:$0xff]  ;;  %v97_v9 = vld [vmem:[%s3158_s1 + $0x10] sm:$0xf]  ;;  %vm133_vm2 = vcmask 1043456   ;;  %s2699_s20 = smov 88  }
  0x4a   :  { %v98_v4 = vld [vmem:[#allocation4] sm:$0xff]  ;;  %v2396_v5 = vpack.c.bf16 %v96_v3, %v95_v2  ;;  %v99_v6 = vld [vmem:[#allocation4 + $0x8] sm:$0xff]  ;;  %v2845_v10 = vld [vmem:[#allocation4 + $0x10] sm:$0xf]  ;;  %s2701_s23 = smov 40   ;;  %s2702_s24 = smov 68  }
  0x4b   :  { %v87_v7 = vld [vmem:[#allocation2] sm:$0xff]  ;;  %v2836_v8 = vpack.c.bf16 %v99_v6, %v98_v4  ;;  %v88_v11 = vld [vmem:[#allocation2 + $0x8] sm:$0xff]  ;;  %v89_v49 = vld [vmem:[#allocation2 + $0x10] sm:$0xff]  ;;  %vm2055_vm3 = vcmask 15360  }
  0x4c   :  { %2213 = vmatprep.mubr.msk.f32.mxu0 %vm108_vm1, %v87_v7  ;;  %2397 = vmatprep.subr.bf16.mxu0 %v2396_v5  ;;  %v2869_v12 = vld [vmem:[%s3160_s3] ss:$0 sm:$0xff]  ;;  %s2700_s3 = smov 20   ;;  %v90_v50 = vld [vmem:[#allocation2 + $0x18] sm:$0xff] }
  0x4d   :  { %2399 = vmatpush3.bf16.msra.mxu0 %v2396_v5  ;;  %2402 = vmatpush3.bf16.msra.mxu1 %v2836_v8 }
  0x4e   :  { %2211 = vmatprep.subr.msk.mxu0 %vm133_vm2, %v97_v9  ;;  %2229 = vmatprep.subr.mxu1 %v2698_v1 }
  0x51   :  { %2212 = vmatpush3.msk.msra.mxu0 %vm133_vm2, %v97_v9  ;;  %2230 = vmatpush3.msk.msra.mxu1 %vm133_vm2, %v2845_v10 }
  0x52   :  { %2214 = vmatmul.mubr.msk.f32.vlgmr.msra.gmra.mrb[0].mxu0 %vm108_vm1, %v88_v11  ;;  %2232 = vmatmul.mubr.f32.vlgmr.msra.gmra.mrb[0].mxu1 %v2698_v1 }
  0x53   :  { %2403 = vmatprep.subr.bf16.mxu1 %v2696_v0  ;;  %2240 = vmatprep.mubr.msk.f32.mxu1 %vm2697_vm0, %v2698_v1 }
  0x54   :  { %2405 = vmatpush3.bf16.msra.mxu1 %v2836_v8  ;;  %2409 = vmatprep.subr.bf16.mxu0 %v2696_v0 }
  0x55   :  { %2238 = vmatprep.subr.mxu1 %v2698_v1  ;;  %2411 = vmatpush3.bf16.msra.mxu0 %v2836_v8 }
  0x56   :  { %2256 = vmatprep.subr.mxu0 %v2698_v1  ;;  %2216 = vmatprep.mubr.msk.f32.mxu0 %vm108_vm1, %v89_v49 }
  0x57   :  { %2217 = vmatmul.mubr.msk.f32.gmra.mrb[2].mxu0 %vm108_vm1, %v90_v50 }
  0x58   :  { %2239 = vmatpush3.msk.msra.mxu1 %vm133_vm2, %v2845_v10 }
  0x59   :  { %2406 = vmatprep.subr.bf16.mxu1 %v2696_v0  ;;  %2257 = vmatpush3.msk.msra.mxu0 %vm133_vm2, %v2845_v10 }
  0x5a   :  { %2415 = vmatprep.subr.bf16.mxu0 %v2696_v0 }
 0x125   :  { %v2215_v13 = vpop.f32.mrb[0].mxu0  ;;  %v314_v14 = vpop.f32.mrb[0].mxu1 }
 0x126   :  { %v203_v15 = vpop.f32.mrb[1].mxu0  ;;  %v2233_v16 = vpop.f32.mrb[1].mxu1  ;;  %v209_v34 = vadd.f32 %v2215_v13, %v2869_v12  ;;  %v91_v13 = vld [vmem:[#allocation2 + $0x20] sm:$0xff] }
 0x127   :  { %v204_v17 = vadd.f32 %v2869_v12, %v203_v15  ;;  %v93_v15 = vld [vmem:[#allocation2 + $0x30] sm:$0xff]  ;;  %2219 = vmatprep.mubr.msk.f32.mxu0 %vm108_vm1, %v91_v13  ;;  %v94_v16 = vld [vmem:[#allocation2 + $0x38] sm:$0xff] }
 0x129   :  { %v318_v18 = vadd.f32 %v314_v14, %v204_v17  ;;  %v92_v14 = vld [vmem:[#allocation2 + $0x28] sm:$0xff] }
 0x12a   :  { %v2218_v54 = vpop.f32.mrb[2].mxu0  ;;  %2220 = vmatmul.mubr.msk.f32.gmra.mrb[4].mxu0 %vm108_vm1, %v92_v14 }
 0x12b   :  { %2468 = vtanh.f32 %v318_v18  ;;  %v319_v20 = vsub.f32 0.0, %v318_v18  ;;  %v213_v55 = vpop.f32.mrb[3].mxu0  ;;  %2222 = vmatprep.mubr.msk.f32.mxu0 %vm108_vm1, %v93_v15 }
 0x12c   :  { %v214_v57 = vadd.f32 %v2869_v12, %v213_v55 }
 0x12d   :  { %v320_v21 = vmul.f32 1.442695, %v319_v20 }
 0x12e   :  { %2223 = vmatmul.mubr.msk.f32.gmra.mrb[6].mxu0 %vm108_vm1, %v94_v16 }
 0x12f   :  { %2470 = vpow2.f32 %v320_v21  ;;  %2258 = vmatprep.mubr.msk.f32.mxu0 %vm2697_vm0, %v2698_v1 }
 0x135   :  { %v2469_v19 = vpop.eup %2468 }
 0x136   :  { %328 = vrot.lane.b32.xlu0 %v2469_v19, %s2699_s20 }
 0x139   :  { %v2471_v22 = vpop.eup %2470 }
 0x13a   :  { %v322_v23 = vadd.f32 1.0, %v2471_v22 }
 0x13c   :  { %2472 = vrcp.f32 %v322_v23 }
 0x146   :  { %v2473_v24 = vpop.eup %2472 }
 0x147   :  { %v326_v27 = vmul.f32 0.0, %v2473_v24 }
 0x1a8   :  { %v329_v25 = vpop.permute.xlu0 %328 }
 0x1a9   :  { %v331_v26 = vmul.f32 %v2473_v24, %v329_v25  ;;  %v219_v25 = vadd.f32 %v2218_v54, %v2869_v12 }
 0x1ab   :  { %333 = vrot.lane.b32.xlu0 %v331_v26, %s2700_s3 }
 0x1fd   :  { %v2916_v20 = vpop.f32.mrb[4].mxu0 }
 0x1fe   :  { %v223_v21 = vpop.f32.mrb[5].mxu0 }
 0x201   :  { %v2918_v22 = vpop.f32.mrb[6].mxu0 }
 0x202   :  { %v2920_v23 = vpop.f32.mrb[7].mxu0 }
 0x21d   :  { %v334_v28 = vpop.permute.xlu0 %333 }
 0x21e   :  { %v336_v29 = vadd.f32 %v334_v28, %v326_v27 }
 0x220   :  { %2474 = vtanh.f32 %v336_v29 }
 0x22a   :  { %v2475_v30 = vpop.eup %2474 }
 0x22b   :  { %339 = vrot.lane.b32.xlu1 %v2475_v30, %s2701_s23 }
 0x29d   :  { %v340_v31 = vpop.permute.xlu1 %339 }
 0x29e   :  { %v342_v32 = vmul.f32 %v2473_v24, %v340_v31 }
 0x2a0   :  { %344 = vrot.lane.b32.xlu1 %v342_v32, %s2702_s24 }
 0x312   :  { %v2876_v33 = vpop.permute.xlu1 %344 }
 0x313   :  { %2241 = vmatmul.mubr.msk.f32.vlgmr.msra.gmra.mrb[2].mxu1 %vm108_vm1, %v2876_v33 }
 0x314   :  { %2408 = vmatpush3.bf16.msra.mxu1 %v2836_v8  ;;  %2249 = vmatprep.mubr.msk.f32.mxu1 %vm2697_vm0, %v2698_v1 }
 0x315   :  { %2247 = vmatprep.subr.mxu1 %v2698_v1 }
 0x318   :  { %2248 = vmatpush3.msk.msra.mxu1 %vm133_vm2, %v2845_v10 }
 0x319   :  { %2412 = vmatprep.subr.bf16.mxu1 %v2696_v0 }
 0x3e6   :  { %v414_v35 = vpop.f32.mrb[2].mxu1 }
 0x3e7   :  { %v418_v36 = vadd.f32 %v414_v35, %v209_v34  ;;  %v2242_v37 = vpop.f32.mrb[3].mxu1 }
 0x3e9   :  { %2476 = vtanh.f32 %v418_v36  ;;  %v419_v39 = vsub.f32 0.0, %v418_v36 }
 0x3eb   :  { %v420_v40 = vmul.f32 1.442695, %v419_v39 }
 0x3ed   :  { %2478 = vpow2.f32 %v420_v40 }
 0x3f3   :  { %v2477_v38 = vpop.eup %2476 }
 0x3f4   :  { %428 = vrot.lane.b32.xlu0 %v2477_v38, %s2699_s20 }
 0x3f7   :  { %v2479_v41 = vpop.eup %2478 }
 0x3f8   :  { %v422_v42 = vadd.f32 1.0, %v2479_v41 }
 0x3fa   :  { %2480 = vrcp.f32 %v422_v42 }
 0x404   :  { %v2481_v43 = vpop.eup %2480 }
 0x405   :  { %v426_v46 = vmul.f32 %v2481_v43, %v336_v29 }
 0x466   :  { %v429_v44 = vpop.permute.xlu0 %428 }
 0x467   :  { %v431_v45 = vmul.f32 %v2481_v43, %v429_v44 }
 0x469   :  { %433 = vrot.lane.b32.xlu1 %v431_v45, %s2700_s3  ;;  %v224_v45 = vadd.f32 %v2869_v12, %v223_v21 }
 0x4db   :  { %v434_v47 = vpop.permute.xlu1 %433 }
 0x4dc   :  { %v436_v48 = vadd.f32 %v434_v47, %v426_v46 }
 0x4de   :  { %2482 = vtanh.f32 %v436_v48 }
 0x4e8   :  { %v2483_v51 = vpop.eup %2482 }
 0x4e9   :  { %439 = vrot.lane.b32.xlu0 %v2483_v51, %s2701_s23 }
 0x55b   :  { %v440_v52 = vpop.permute.xlu0 %439 }
 0x55c   :  { %v442_v53 = vmul.f32 %v2481_v43, %v440_v52 }
 0x55e   :  { %444 = vrot.lane.b32.xlu1 %v442_v53, %s2702_s24 }
 0x5d0   :  { %v2894_v56 = vpop.permute.xlu1 %444 }
 0x5d1   :  { %2250 = vmatmul.mubr.msk.f32.vlgmr.msra.gmra.mrb[4].mxu1 %vm108_vm1, %v2894_v56 }
 0x5d2   :  { %2414 = vmatpush3.bf16.msra.mxu1 %v2836_v8  ;;  %2267 = vmatprep.mubr.msk.f32.mxu1 %vm2697_vm0, %v2698_v1 }
 0x5d3   :  { %2265 = vmatprep.subr.mxu1 %v2698_v1 }
 0x5d6   :  { %2266 = vmatpush3.msk.msra.mxu1 %vm133_vm2, %v2845_v10 }
 0x5d7   :  { %2418 = vmatprep.subr.bf16.mxu1 %v2696_v0 }
 0x6a4   :  { %v514_v58 = vpop.f32.mrb[4].mxu1 }
 0x6a5   :  { %v518_v59 = vadd.f32 %v514_v58, %v214_v57  ;;  %v2251_v60 = vpop.f32.mrb[5].mxu1 }
 0x6a7   :  { %2484 = vtanh.f32 %v518_v59  ;;  %v519_v62 = vsub.f32 0.0, %v518_v59 }
 0x6a9   :  { %v520_v63 = vmul.f32 1.442695, %v519_v62 }
 0x6ab   :  { %2486 = vpow2.f32 %v520_v63 }
 0x6b1   :  { %v2485_v61 = vpop.eup %2484 }
 0x6b2   :  { %528 = vrot.lane.b32.xlu0 %v2485_v61, %s2699_s20 }
 0x6b5   :  { %v2487_v2 = vpop.eup %2486 }
 0x6b6   :  { %v522_v3 = vadd.f32 1.0, %v2487_v2 }
 0x6b8   :  { %2488 = vrcp.f32 %v522_v3  ;;  %v229_v3 = vadd.f32 %v2916_v20, %v2869_v12  ;;  %v1044_v20 = vld [vmem:[#allocation6 + $0x8] sm:$0xff] }
 0x6c2   :  { %v2489_v4 = vpop.eup %2488 }
 0x6c3   :  { %v526_v7 = vmul.f32 %v2489_v4, %v436_v48 }
 0x724   :  { %v529_v5 = vpop.permute.xlu0 %528 }
 0x725   :  { %v531_v6 = vmul.f32 %v2489_v4, %v529_v5 }
 0x727   :  { %533 = vrot.lane.b32.xlu1 %v531_v6, %s2700_s3 }
 0x799   :  { %v534_v9 = vpop.permute.xlu1 %533 }
 0x79a   :  { %v536_v11 = vadd.f32 %v534_v9, %v526_v7 }
 0x79c   :  { %2490 = vtanh.f32 %v536_v11 }
 0x7a6   :  { %v2491_v17 = vpop.eup %2490 }
 0x7a7   :  { %539 = vrot.lane.b32.xlu0 %v2491_v17, %s2701_s23 }
 0x819   :  { %v540_v18 = vpop.permute.xlu0 %539 }
 0x81a   :  { %v542_v19 = vmul.f32 %v2489_v4, %v540_v18 }
 0x81c   :  { %544 = vrot.lane.b32.xlu1 %v542_v19, %s2702_s24  ;;  %v1043_v19 = vld [vmem:[#allocation6] sm:$0xff] }
 0x81d   :  { %v2424_v21 = vpack.c.bf16 %v1044_v20, %v1043_v19 }
 0x88e   :  { %v2922_v24 = vpop.permute.xlu1 %544 }
 0x88f   :  { %2259 = vmatmul.mubr.msk.f32.vlgmr.msra.gmra.mrb[8].mxu0 %vm108_vm1, %v2922_v24 }
 0x890   :  { %2417 = vmatpush3.bf16.msra.mxu0 %v2836_v8  ;;  %2276 = vmatprep.mubr.msk.f32.mxu0 %vm2697_vm0, %v2698_v1 }
 0x891   :  { %2274 = vmatprep.subr.mxu0 %v2698_v1 }
 0x894   :  { %2275 = vmatpush3.msk.msra.mxu0 %vm133_vm2, %v2845_v10 }
 0x895   :  { %2421 = vmatprep.subr.bf16.mxu0 %v2696_v0 }
 0x962   :  { %v614_v26 = vpop.f32.mrb[8].mxu0 }
 0x963   :  { %v618_v27 = vadd.f32 %v614_v26, %v219_v25  ;;  %v2260_v28 = vpop.f32.mrb[9].mxu0 }
 0x965   :  { %2492 = vtanh.f32 %v618_v27  ;;  %v619_v30 = vsub.f32 0.0, %v618_v27 }
 0x967   :  { %v620_v31 = vmul.f32 1.442695, %v619_v30 }
 0x969   :  { %2494 = vpow2.f32 %v620_v31 }
 0x96f   :  { %v2493_v29 = vpop.eup %2492 }
 0x970   :  { %628 = vrot.lane.b32.xlu0 %v2493_v29, %s2699_s20  ;;  %v1045_v29 = vld [vmem:[#allocation6 + $0x10] sm:$0xf] }
 0x973   :  { %v2495_v32 = vpop.eup %2494 }
 0x974   :  { %v622_v34 = vadd.f32 1.0, %v2495_v32 }
 0x976   :  { %2496 = vrcp.f32 %v622_v34 }
 0x980   :  { %v2497_v35 = vpop.eup %2496 }
 0x981   :  { %v626_v38 = vmul.f32 %v2497_v35, %v536_v11 }
 0x9e2   :  { %v629_v36 = vpop.permute.xlu0 %628 }
 0x9e3   :  { %v631_v37 = vmul.f32 %v2497_v35, %v629_v36 }
 0x9e5   :  { %633 = vrot.lane.b32.xlu1 %v631_v37, %s2700_s3 }
 0xa57   :  { %v634_v39 = vpop.permute.xlu1 %633 }
 0xa58   :  { %v636_v40 = vadd.f32 %v634_v39, %v626_v38 }
 0xa5a   :  { %2498 = vtanh.f32 %v636_v40 }
 0xa64   :  { %v2499_v41 = vpop.eup %2498 }
 0xa65   :  { %639 = vrot.lane.b32.xlu0 %v2499_v41, %s2701_s23 }
 0xad7   :  { %v640_v42 = vpop.permute.xlu0 %639 }
 0xad8   :  { %v642_v43 = vmul.f32 %v2497_v35, %v640_v42 }
 0xada   :  { %644 = vrot.lane.b32.xlu1 %v642_v43, %s2702_s24 }
 0xb4c   :  { %v2938_v44 = vpop.permute.xlu1 %644 }
 0xb4d   :  { %2268 = vmatmul.mubr.msk.f32.vlgmr.msra.gmra.mrb[6].mxu1 %vm108_vm1, %v2938_v44 }
 0xb4e   :  { %2420 = vmatpush3.bf16.msra.mxu1 %v2836_v8  ;;  %2285 = vmatprep.mubr.msk.f32.mxu1 %vm2697_vm0, %v2698_v1 }
 0xb4f   :  { %2283 = vmatprep.subr.mxu1 %v2698_v1 }
 0xb52   :  { %2284 = vmatpush3.msk.msra.mxu1 %vm133_vm2, %v2845_v10 }
 0xb53   :  { %2425 = vmatprep.subr.bf16.mxu1 %v2424_v21 }
 0xc20   :  { %v714_v46 = vpop.f32.mrb[6].mxu1 }
 0xc21   :  { %v718_v47 = vadd.f32 %v714_v46, %v224_v45  ;;  %v2269_v48 = vpop.f32.mrb[7].mxu1 }
 0xc23   :  { %2500 = vtanh.f32 %v718_v47  ;;  %v719_v50 = vsub.f32 0.0, %v718_v47 }
 0xc25   :  { %v720_v51 = vmul.f32 1.442695, %v719_v50  ;;  %v1047_v50 = vld [vmem:[#allocation7 + $0x8] sm:$0xff] }
 0xc27   :  { %2502 = vpow2.f32 %v720_v51 }
 0xc2d   :  { %v2501_v49 = vpop.eup %2500 }
 0xc2e   :  { %728 = vrot.lane.b32.xlu0 %v2501_v49, %s2699_s20  ;;  %v1046_v49 = vld [vmem:[#allocation7] sm:$0xff] }
 0xc2f   :  { %v2999_v51 = vpack.c.bf16 %v1047_v50, %v1046_v49 }
 0xc31   :  { %v2503_v52 = vpop.eup %2502 }
 0xc32   :  { %v722_v53 = vadd.f32 1.0, %v2503_v52  ;;  %v3003_v52 = vld [vmem:[#allocation7 + $0x10] sm:$0xf] }
 0xc34   :  { %2504 = vrcp.f32 %v722_v53 }
 0xc3e   :  { %v2505_v54 = vpop.eup %2504 }
 0xc3f   :  { %v726_v58 = vmul.f32 %v2505_v54, %v636_v40 }
 0xca0   :  { %v729_v55 = vpop.permute.xlu0 %728 }
 0xca1   :  { %v731_v57 = vmul.f32 %v2505_v54, %v729_v55 }
 0xca3   :  { %733 = vrot.lane.b32.xlu1 %v731_v57, %s2700_s3  ;;  %v239_v57 = vadd.f32 %v2918_v22, %v2869_v12 }
 0xd15   :  { %v734_v59 = vpop.permute.xlu1 %733 }
 0xd16   :  { %v736_v60 = vadd.f32 %v734_v59, %v726_v58 }
 0xd18   :  { %2506 = vtanh.f32 %v736_v60 }
 0xd22   :  { %v2507_v61 = vpop.eup %2506 }
 0xd23   :  { %739 = vrot.lane.b32.xlu0 %v2507_v61, %s2701_s23  ;;  %v3033_v61 = vld [vmem:[%s3163_s6] ss:$0 sm:$0xff] }
 0xd95   :  { %v740_v62 = vpop.permute.xlu0 %739 }
 0xd96   :  { %v742_v63 = vmul.f32 %v2505_v54, %v740_v62 }
 0xd98   :  { %744 = vrot.lane.b32.xlu1 %v742_v63, %s2702_s24 }
 0xe0a   :  { %v745_v2 = vpop.permute.xlu1 %744 }
 0xe0b   :  { %2277 = vmatmul.mubr.msk.f32.vlgmr.msra.gmra.mrb[10].mxu0 %vm108_vm1, %v745_v2 }
 0xe0c   :  { %2423 = vmatpush3.bf16.msra.mxu0 %v2836_v8  ;;  %2294 = vmatprep.mubr.msk.f32.mxu0 %vm2697_vm0, %v2698_v1 }
 0xe0d   :  { %2292 = vmatprep.subr.mxu0 %v2698_v1 }
 0xe10   :  { %2293 = vmatpush3.msk.msra.mxu0 %vm133_vm2, %v2845_v10 }
 0xe11   :  { %2428 = vmatprep.subr.bf16.mxu0 %v2696_v0 }
 0xede   :  { %v814_v4 = vpop.f32.mrb[10].mxu0 }
 0xedf   :  { %v818_v5 = vadd.f32 %v814_v4, %v229_v3  ;;  %v2278_v6 = vpop.f32.mrb[11].mxu0 }
 0xee1   :  { %2508 = vtanh.f32 %v818_v5  ;;  %v819_v8 = vsub.f32 0.0, %v818_v5 }
 0xee3   :  { %v820_v9 = vmul.f32 1.442695, %v819_v8 }
 0xee5   :  { %2510 = vpow2.f32 %v820_v9 }
 0xeeb   :  { %v2509_v7 = vpop.eup %2508 }
 0xeec   :  { %828 = vrot.lane.b32.xlu0 %v2509_v7, %s2699_s20 }
 0xeef   :  { %v2511_v11 = vpop.eup %2510 }
 0xef0   :  { %v822_v13 = vadd.f32 1.0, %v2511_v11 }
 0xef2   :  { %2512 = vrcp.f32 %v822_v13 }
 0xefc   :  { %v2513_v14 = vpop.eup %2512 }
 0xefd   :  { %v826_v16 = vmul.f32 %v2513_v14, %v736_v60 }
 0xf5e   :  { %v829_v10 = vpop.permute.xlu0 %828 }
 0xf5f   :  { %v831_v15 = vmul.f32 %v2513_v14, %v829_v10 }
 0xf61   :  { %833 = vrot.lane.b32.xlu1 %v831_v15, %s2700_s3 }
 0xfd3   :  { %v834_v17 = vpop.permute.xlu1 %833 }
 0xfd4   :  { %v836_v18 = vadd.f32 %v834_v17, %v826_v16 }
 0xfd6   :  { %2514 = vtanh.f32 %v836_v18 }
 0xfe0   :  { %v2515_v25 = vpop.eup %2514 }
 0xfe1   :  { %839 = vrot.lane.b32.xlu0 %v2515_v25, %s2701_s23 }
0x1053   :  { %v840_v26 = vpop.permute.xlu0 %839 }
0x1054   :  { %v842_v27 = vmul.f32 %v2513_v14, %v840_v26 }
0x1056   :  { %844 = vrot.lane.b32.xlu1 %v842_v27, %s2702_s24 }
0x10c8   :  { %v845_v28 = vpop.permute.xlu1 %844 }
0x10c9   :  { %2286 = vmatmul.mubr.msk.f32.vlgmr.msra.gmra.mrb[8].mxu1 %vm108_vm1, %v845_v28 }
0x10ca   :  { %2427 = vmatpush3.bf16.msra.mxu1 %v2424_v21  ;;  %2303 = vmatprep.mubr.msk.f32.mxu1 %vm108_vm1, %v2876_v33  ;;  %v234_v33 = vadd.f32 %v2869_v12, %v2920_v23 }
0x10cb   :  { %2301 = vmatprep.subr.msk.mxu1 %vm133_vm2, %v1045_v29 }
0x10ce   :  { %2302 = vmatpush3.msk.msra.mxu1 %vm133_vm2, %v1045_v29 }
0x10cf   :  { %2304 = vmatmul.mubr.msk.f32.vlgmr.msra.gmra.mrb[10].mxu1 %vm108_vm1, %v2894_v56  ;;  %2437 = vmatprep.subr.bf16.mxu1 %v2696_v0 }
0x10d0   :  { %2306 = vmatprep.mubr.msk.f32.mxu1 %vm108_vm1, %v2922_v24  ;;  %2439 = vmatpush3.bf16.msra.mxu1 %v2999_v51 }
0x10d1   :  { %2346 = vmatprep.subr.mxu1 %v2698_v1 }
0x10d3   :  { %2307 = vmatmul.mubr.msk.f32.gmra.mrb[12].mxu1 %vm108_vm1, %v2938_v44 }
0x10d4   :  { %2309 = vmatprep.mubr.msk.f32.mxu1 %vm108_vm1, %v745_v2  ;;  %2347 = vmatpush3.msk.msra.mxu1 %vm133_vm2, %v3003_v52 }
0x10d5   :  { %2443 = vmatprep.subr.bf16.mxu1 %v2696_v0 }
0x10d7   :  { %2310 = vmatmul.mubr.msk.f32.gmra.mrb[14].mxu1 %vm108_vm1, %v845_v28 }
0x119c   :  { %v914_v30 = vpop.f32.mrb[8].mxu1 }
0x119d   :  { %v918_v31 = vadd.f32 %v914_v30, %v234_v33  ;;  %v2287_v32 = vpop.f32.mrb[9].mxu1 }
0x119f   :  { %2516 = vtanh.f32 %v918_v31  ;;  %v919_v39 = vsub.f32 0.0, %v918_v31 }
0x11a1   :  { %v920_v23 = vmul.f32 1.442695, %v919_v39 }
0x11a2   :  { %v2983_v56 = vpop.f32.mrb[10].mxu1 }
0x11a3   :  { %v1130_v34 = vpop.f32.mrb[11].mxu1  ;;  %2518 = vpow2.f32 %v920_v23 }
0x11a4   :  { %v1131_v62 = vadd.f32 %v3033_v61, %v1130_v34 }
0x11a6   :  { %v2985_v35 = vpop.f32.mrb[12].mxu1 }
0x11a7   :  { %v2987_v24 = vpop.f32.mrb[13].mxu1 }
0x11a9   :  { %v2517_v36 = vpop.eup %2516 }
0x11aa   :  { %v2989_v37 = vpop.f32.mrb[14].mxu1  ;;  %928 = vrot.lane.b32.xlu0 %v2517_v36, %s2699_s20 }
0x11ab   :  { %v2992_v38 = vpop.f32.mrb[15].mxu1 }
0x11ad   :  { %v2519_v40 = vpop.eup %2518 }
0x11ae   :  { %v922_v41 = vadd.f32 1.0, %v2519_v40 }
0x11b0   :  { %2520 = vrcp.f32 %v922_v41 }
0x11ba   :  { %v2521_v42 = vpop.eup %2520 }
0x11bb   :  { %v926_v45 = vmul.f32 %v2521_v42, %v836_v18  ;;  %v1136_v18 = vadd.f32 %v2983_v56, %v3033_v61 }
0x121c   :  { %v929_v43 = vpop.permute.xlu0 %928 }
0x121d   :  { %v931_v44 = vmul.f32 %v2521_v42, %v929_v43 }
0x121f   :  { %933 = vrot.lane.b32.xlu1 %v931_v44, %s2700_s3 }
0x1291   :  { %v934_v46 = vpop.permute.xlu1 %933 }
0x1292   :  { %v2995_v47 = vadd.f32 %v934_v46, %v926_v45 }
0x1294   :  { %2522 = vtanh.f32 %v2995_v47 }
0x129e   :  { %v2523_v48 = vpop.eup %2522 }
0x129f   :  { %939 = vrot.lane.b32.xlu0 %v2523_v48, %s2701_s23 }
0x1311   :  { %v940_v53 = vpop.permute.xlu0 %939 }
0x1312   :  { %v942_v54 = vmul.f32 %v2521_v42, %v940_v53 }
0x1314   :  { %944 = vrot.lane.b32.xlu1 %v942_v54, %s2702_s24 }
0x1386   :  { %v945_v55 = vpop.permute.xlu1 %944 }
0x1387   :  { %2295 = vmatmul.mubr.msk.f32.vlgmr.msra.gmra.mrb[12].mxu0 %vm108_vm1, %v945_v55  ;;  %2312 = vmatprep.mubr.msk.f32.mxu1 %vm108_vm1, %v945_v55 }
0x1388   :  { %2430 = vmatpush3.bf16.msra.mxu0 %v2999_v51  ;;  %2321 = vmatprep.mubr.msk.f32.mxu0 %vm2697_vm0, %v2698_v1 }
0x1389   :  { %2319 = vmatprep.subr.mxu0 %v2698_v1 }
0x138c   :  { %2320 = vmatpush3.msk.msra.mxu0 %vm133_vm2, %v3003_v52 }
0x138d   :  { %2322 = vmatmul.mubr.f32.vlgmr.msra.gmra.mrb[14].mxu0 %v2698_v1  ;;  %2431 = vmatprep.subr.bf16.mxu0 %v2696_v0 }
0x138e   :  { %2433 = vmatpush3.bf16.msra.mxu0 %v2999_v51  ;;  %2330 = vmatprep.mubr.msk.f32.mxu0 %vm2697_vm0, %v2698_v1 }
0x138f   :  { %2328 = vmatprep.subr.mxu0 %v2698_v1 }
0x1392   :  { %2329 = vmatpush3.msk.msra.mxu0 %vm133_vm2, %v3003_v52 }
0x1393   :  { %2434 = vmatprep.subr.bf16.mxu0 %v2696_v0 }
0x145a   :  { %v1014_v58 = vpop.f32.mrb[12].mxu0 }
0x145b   :  { %v3028_v59 = vadd.f32 %v1014_v58, %v239_v57  ;;  %v2296_v60 = vpop.f32.mrb[13].mxu0 }
0x145d   :  { %v1019_v23 = vsub.f32 0.0, %v3028_v59 }
0x145f   :  { %v1020_v40 = vmul.f32 1.442695, %v1019_v23  ;;  %v1151_v23 = vadd.f32 %v3033_v61, %v2992_v38 }
0x1460   :  { %v1238_v63 = vpop.f32.mrb[14].mxu0 }
0x1461   :  { %v1242_v2 = vadd.f32 %v1238_v63, %v1131_v62  ;;  %v2323_v3 = vpop.f32.mrb[15].mxu0 }
0x1463   :  { %2524 = vtanh.f32 %v1242_v2  ;;  %v1243_v5 = vsub.f32 0.0, %v1242_v2 }
0x1465   :  { %v1244_v12 = vmul.f32 1.442695, %v1243_v5 }
0x1467   :  { %2526 = vpow2.f32 %v1244_v12 }
0x146d   :  { %v2525_v4 = vpop.eup %2524 }
0x146e   :  { %1252 = vrot.lane.b32.xlu0 %v2525_v4, %s2699_s20 }
0x1471   :  { %v2527_v22 = vpop.eup %2526 }
0x1472   :  { %v1246_v6 = vadd.f32 1.0, %v2527_v22 }
0x1474   :  { %2528 = vrcp.f32 %v1246_v6 }
0x147e   :  { %v2529_v7 = vpop.eup %2528 }
0x147f   :  { %v1250_v11 = vmul.f32 0.0, %v2529_v7 }
0x14e0   :  { %v1253_v8 = vpop.permute.xlu0 %1252 }
0x14e1   :  { %v1255_v9 = vmul.f32 %v2529_v7, %v1253_v8 }
0x14e3   :  { %1257 = vrot.lane.b32.xlu1 %v1255_v9, %s2700_s3 }
0x1555   :  { %v1258_v13 = vpop.permute.xlu1 %1257 }
0x1556   :  { %v1260_v14 = vadd.f32 %v1258_v13, %v1250_v11 }
0x1558   :  { %2530 = vtanh.f32 %v1260_v14 }
0x1562   :  { %v2531_v10 = vpop.eup %2530 }
0x1563   :  { %1263 = vrot.lane.b32.xlu0 %v2531_v10, %s2701_s23 }
0x15d5   :  { %v1264_v15 = vpop.permute.xlu0 %1263 }
0x15d6   :  { %v1266_v16 = vmul.f32 %v2529_v7, %v1264_v15 }
0x15d8   :  { %1268 = vrot.lane.b32.xlu1 %v1266_v16, %s2702_s24 }
0x164a   :  { %v1269_v17 = vpop.permute.xlu1 %1268 }
0x164b   :  { %2331 = vmatmul.mubr.msk.f32.vlgmr.msra.gmra.mrb[16].mxu0 %vm108_vm1, %v1269_v17  ;;  %v1146_v17 = vadd.f32 %v2985_v35, %v3033_v61 }
0x164c   :  { %2436 = vmatpush3.bf16.msra.mxu0 %v2999_v51  ;;  %2339 = vmatprep.mubr.msk.f32.mxu0 %vm2697_vm0, %v2698_v1 }
0x164d   :  { %2337 = vmatprep.subr.mxu0 %v2698_v1 }
0x1650   :  { %2338 = vmatpush3.msk.msra.mxu0 %vm133_vm2, %v3003_v52 }
0x1651   :  { %2440 = vmatprep.subr.bf16.mxu0 %v2696_v0 }
0x171e   :  { %v1338_v19 = vpop.f32.mrb[16].mxu0 }
0x171f   :  { %v1342_v20 = vadd.f32 %v1338_v19, %v1136_v18  ;;  %v2332_v21 = vpop.f32.mrb[17].mxu0 }
0x1721   :  { %2532 = vtanh.f32 %v1342_v20  ;;  %v1343_v26 = vsub.f32 0.0, %v1342_v20 }
0x1723   :  { %v1344_v27 = vmul.f32 1.442695, %v1343_v26 }
0x1725   :  { %2534 = vpow2.f32 %v1344_v27 }
0x172b   :  { %v2533_v25 = vpop.eup %2532 }
0x172c   :  { %1352 = vrot.lane.b32.xlu0 %v2533_v25, %s2699_s20 }
0x172f   :  { %v2535_v28 = vpop.eup %2534 }
0x1730   :  { %v1346_v29 = vadd.f32 1.0, %v2535_v28 }
0x1732   :  { %2536 = vrcp.f32 %v1346_v29 }
0x173c   :  { %v2537_v33 = vpop.eup %2536 }
0x173d   :  { %v1350_v32 = vmul.f32 %v2537_v33, %v1260_v14 }
0x179e   :  { %v1353_v30 = vpop.permute.xlu0 %1352 }
0x179f   :  { %v1355_v31 = vmul.f32 %v2537_v33, %v1353_v30 }
0x17a1   :  { %1357 = vrot.lane.b32.xlu1 %v1355_v31, %s2700_s3 }
0x1813   :  { %v1358_v56 = vpop.permute.xlu1 %1357 }
0x1814   :  { %v1360_v34 = vadd.f32 %v1358_v56, %v1350_v32 }
0x1816   :  { %2538 = vtanh.f32 %v1360_v34 }
0x1817   :  { %2540 = vtanh.f32 %v3028_v59 }
0x1818   :  { %2542 = vpow2.f32 %v1020_v40 }
0x1820   :  { %v2539_v36 = vpop.eup %2538 }
0x1821   :  { %1363 = vrot.lane.b32.xlu0 %v2539_v36, %s2701_s23  ;;  %v2541_v39 = vpop.eup %2540 }
0x1822   :  { %v2543_v41 = vpop.eup %2542 }
0x1823   :  { %v1022_v42 = vadd.f32 1.0, %v2543_v41 }
0x1825   :  { %1028 = vrot.lane.b32.xlu0 %v2541_v39, %s2699_s20  ;;  %2544 = vrcp.f32 %v1022_v42 }
0x182f   :  { %v2545_v45 = vpop.eup %2544 }
0x1830   :  { %v1026_v50 = vmul.f32 %v2545_v45, %v2995_v47  ;;  %v1141_v47 = vadd.f32 %v3033_v61, %v2987_v24 }
0x1893   :  { %v1364_v43 = vpop.permute.xlu0 %1363 }
0x1894   :  { %v1366_v44 = vmul.f32 %v2537_v33, %v1364_v43 }
0x1896   :  { %1368 = vrot.lane.b32.xlu1 %v1366_v44, %s2702_s24 }
0x1897   :  { %v1029_v46 = vpop.permute.xlu0 %1028 }
0x1898   :  { %v1031_v48 = vmul.f32 %v2545_v45, %v1029_v46 }
0x189a   :  { %1033 = vrot.lane.b32.xlu0 %v1031_v48, %s2700_s3 }
0x1908   :  { %v1369_v49 = vpop.permute.xlu1 %1368 }
0x1909   :  { %2340 = vmatmul.mubr.msk.f32.vlgmr.msra.gmra.mrb[18].mxu0 %vm108_vm1, %v1369_v49 }
0x190a   :  { %2442 = vmatpush3.bf16.msra.mxu0 %v2999_v51  ;;  %2357 = vmatprep.mubr.msk.f32.mxu0 %vm2697_vm0, %v2698_v1 }
0x190b   :  { %2355 = vmatprep.subr.mxu0 %v2698_v1 }
0x190c   :  { %v1034_v53 = vpop.permute.xlu0 %1033 }
0x190d   :  { %v1036_v54 = vadd.f32 %v1034_v53, %v1026_v50 }
0x190e   :  { %2356 = vmatpush3.msk.msra.mxu0 %vm133_vm2, %v3003_v52 }
0x190f   :  { %2546 = vtanh.f32 %v1036_v54  ;;  %2446 = vmatprep.subr.bf16.mxu0 %v2696_v0 }
0x1919   :  { %v2547_v55 = vpop.eup %2546 }
0x191a   :  { %1039 = vrot.lane.b32.xlu0 %v2547_v55, %s2701_s23 }
0x198c   :  { %v1040_v57 = vpop.permute.xlu0 %1039 }
0x198d   :  { %v1042_v58 = vmul.f32 %v2545_v45, %v1040_v57 }
0x198f   :  { %1057 = vrot.lane.b32.xlu0 %v1042_v58, %s2702_s24 }
0x19dc   :  { %v1438_v59 = vpop.f32.mrb[18].mxu0 }
0x19dd   :  { %v1442_v60 = vadd.f32 %v1438_v59, %v1141_v47  ;;  %v2341_v62 = vpop.f32.mrb[19].mxu0  ;;  %v1156_v59 = vadd.f32 %v2989_v37, %v3033_v61 }
0x19df   :  { %2548 = vtanh.f32 %v1442_v60  ;;  %v1443_v3 = vsub.f32 0.0, %v1442_v60 }
0x19e1   :  { %v1444_v4 = vmul.f32 1.442695, %v1443_v3 }
0x19e3   :  { %2550 = vpow2.f32 %v1444_v4 }
0x19e9   :  { %v2549_v63 = vpop.eup %2548 }
0x19ea   :  { %1452 = vrot.lane.b32.xlu1 %v2549_v63, %s2699_s20 }
0x19ed   :  { %v2551_v5 = vpop.eup %2550 }
0x19ee   :  { %v1446_v12 = vadd.f32 1.0, %v2551_v5 }
0x19f0   :  { %2552 = vrcp.f32 %v1446_v12 }
0x19fa   :  { %v2553_v24 = vpop.eup %2552 }
0x19fb   :  { %v1450_v7 = vmul.f32 %v2553_v24, %v1360_v34 }
0x1a01   :  { %v1058_v2 = vpop.permute.xlu0 %1057 }
0x1a02   :  { %2313 = vmatmul.mubr.msk.f32.gmra.mrb[16].mxu1 %vm108_vm1, %v1058_v2 }
0x1a03   :  { %2348 = vmatprep.mubr.msk.f32.mxu1 %vm2697_vm0, %v2698_v1 }
0x1a5c   :  { %v1453_v22 = vpop.permute.xlu1 %1452 }
0x1a5d   :  { %v1455_v6 = vmul.f32 %v2553_v24, %v1453_v22 }
0x1a5f   :  { %1457 = vrot.lane.b32.xlu1 %v1455_v6, %s2700_s3 }
0x1ad1   :  { %v1458_v8 = vpop.permute.xlu1 %1457 }
0x1ad2   :  { %v1460_v9 = vadd.f32 %v1458_v8, %v1450_v7 }
0x1ad4   :  { %2554 = vtanh.f32 %v1460_v9 }
0x1ad5   :  { %v3076_v11 = vpop.f32.mrb[16].mxu1 }
0x1ad6   :  { %v3078_v13 = vpop.f32.mrb[17].mxu1 }
0x1ade   :  { %v2555_v14 = vpop.eup %2554 }
0x1adf   :  { %1463 = vrot.lane.b32.xlu1 %v2555_v14, %s2701_s23 }
0x1b51   :  { %v1464_v10 = vpop.permute.xlu1 %1463 }
0x1b52   :  { %v1466_v15 = vmul.f32 %v2553_v24, %v1464_v10  ;;  %v1161_v10 = vadd.f32 %v3033_v61, %v3078_v13 }
0x1b54   :  { %1468 = vrot.lane.b32.xlu1 %v1466_v15, %s2702_s24 }
0x1bc6   :  { %v1469_v16 = vpop.permute.xlu1 %1468 }
0x1bc7   :  { %2349 = vmatmul.mubr.msk.f32.vlgmr.msra.gmra.mrb[18].mxu1 %vm108_vm1, %v1469_v16 }
0x1bc8   :  { %2445 = vmatpush3.bf16.msra.mxu1 %v2999_v51  ;;  %2366 = vmatprep.mubr.msk.f32.mxu1 %vm2697_vm0, %v2698_v1 }
0x1bc9   :  { %2364 = vmatprep.subr.mxu1 %v2698_v1 }
0x1bcc   :  { %2365 = vmatpush3.msk.msra.mxu1 %vm133_vm2, %v3003_v52 }
0x1bcd   :  { %2449 = vmatprep.subr.bf16.mxu1 %v2696_v0 }
0x1c9a   :  { %v1538_v18 = vpop.f32.mrb[18].mxu1 }
0x1c9b   :  { %v1542_v19 = vadd.f32 %v1538_v18, %v1146_v17  ;;  %v2350_v20 = vpop.f32.mrb[19].mxu1 }
0x1c9d   :  { %2556 = vtanh.f32 %v1542_v19  ;;  %v1543_v25 = vsub.f32 0.0, %v1542_v19 }
0x1c9f   :  { %v1544_v26 = vmul.f32 1.442695, %v1543_v25 }
0x1ca1   :  { %2558 = vpow2.f32 %v1544_v26 }
0x1ca7   :  { %v2557_v21 = vpop.eup %2556 }
0x1ca8   :  { %1552 = vrot.lane.b32.xlu0 %v2557_v21, %s2699_s20 }
0x1cab   :  { %v2559_v27 = vpop.eup %2558 }
0x1cac   :  { %v1546_v28 = vadd.f32 1.0, %v2559_v27 }
0x1cae   :  { %2560 = vrcp.f32 %v1546_v28 }
0x1cb8   :  { %v2561_v29 = vpop.eup %2560 }
0x1cb9   :  { %v1550_v31 = vmul.f32 %v2561_v29, %v1460_v9 }
0x1d1a   :  { %v1553_v33 = vpop.permute.xlu0 %1552 }
0x1d1b   :  { %v1555_v30 = vmul.f32 %v2561_v29, %v1553_v33 }
0x1d1d   :  { %1557 = vrot.lane.b32.xlu1 %v1555_v30, %s2700_s3 }
0x1d8f   :  { %v1558_v35 = vpop.permute.xlu1 %1557 }
0x1d90   :  { %v1560_v32 = vadd.f32 %v1558_v35, %v1550_v31 }
0x1d92   :  { %2562 = vtanh.f32 %v1560_v32 }
0x1d9c   :  { %v2563_v56 = vpop.eup %2562 }
0x1d9d   :  { %1563 = vrot.lane.b32.xlu0 %v2563_v56, %s2701_s23  ;;  %v1166_v56 = vadd.f32 %v3076_v11, %v3033_v61 }
0x1e0f   :  { %v1564_v34 = vpop.permute.xlu0 %1563 }
0x1e10   :  { %v1566_v36 = vmul.f32 %v2561_v29, %v1564_v34 }
0x1e12   :  { %1568 = vrot.lane.b32.xlu1 %v1566_v36, %s2702_s24 }
0x1e84   :  { %v1569_v39 = vpop.permute.xlu1 %1568 }
0x1e85   :  { %2358 = vmatmul.mubr.msk.f32.vlgmr.msra.gmra.mrb[20].mxu0 %vm108_vm1, %v1569_v39 }
0x1e86   :  { %2448 = vmatpush3.bf16.msra.mxu0 %v2999_v51  ;;  %2375 = vmatprep.mubr.msk.f32.mxu0 %vm2697_vm0, %v2698_v1 }
0x1e87   :  { %2373 = vmatprep.subr.mxu0 %v2698_v1 }
0x1e8a   :  { %2374 = vmatpush3.msk.msra.mxu0 %vm133_vm2, %v3003_v52 }
0x1e8b   :  { %2452 = vmatprep.subr.bf16.mxu0 %v2696_v0 }
0x1f58   :  { %v1638_v40 = vpop.f32.mrb[20].mxu0 }
0x1f59   :  { %v1642_v41 = vadd.f32 %v1638_v40, %v1151_v23  ;;  %v2359_v42 = vpop.f32.mrb[21].mxu0 }
0x1f5b   :  { %2564 = vtanh.f32 %v1642_v41  ;;  %v1643_v44 = vsub.f32 0.0, %v1642_v41 }
0x1f5d   :  { %v1644_v45 = vmul.f32 1.442695, %v1643_v44 }
0x1f5f   :  { %2566 = vpow2.f32 %v1644_v45 }
0x1f65   :  { %v2565_v43 = vpop.eup %2564 }
0x1f66   :  { %1652 = vrot.lane.b32.xlu0 %v2565_v43, %s2699_s20 }
0x1f69   :  { %v2567_v46 = vpop.eup %2566 }
0x1f6a   :  { %v1646_v48 = vadd.f32 1.0, %v2567_v46 }
0x1f6c   :  { %2568 = vrcp.f32 %v1646_v48 }
0x1f76   :  { %v2569_v49 = vpop.eup %2568 }
0x1f77   :  { %v1650_v0 = vmul.f32 %v2569_v49, %v1560_v32 }
0x1fd8   :  { %v1653_v50 = vpop.permute.xlu0 %1652 }
0x1fd9   :  { %v1655_v53 = vmul.f32 %v2569_v49, %v1653_v50  ;;  %v1968_v50 = vld [vmem:[%s3164_s7 + $0x8] sm:$0xff] }
0x1fdb   :  { %1657 = vrot.lane.b32.xlu1 %v1655_v53, %s2700_s3 }
0x204d   :  { %v1658_v38 = vpop.permute.xlu1 %1657 }
0x204e   :  { %v1660_v54 = vadd.f32 %v1658_v38, %v1650_v0  ;;  %v1969_v0 = vld [vmem:[%s3164_s7 + $0x10] sm:$0xf] }
0x2050   :  { %2570 = vtanh.f32 %v1660_v54 }
0x205a   :  { %v2571_v55 = vpop.eup %2570 }
0x205b   :  { %1663 = vrot.lane.b32.xlu0 %v2571_v55, %s2701_s23 }
0x20cd   :  { %v1664_v57 = vpop.permute.xlu0 %1663 }
0x20ce   :  { %v1666_v58 = vmul.f32 %v2569_v49, %v1664_v57  ;;  %v1967_v49 = vld [vmem:[%s3164_s7] sm:$0xff] }
0x20cf   :  { %v2453_v53 = vpack.c.bf16 %v1968_v50, %v1967_v49 }
0x20d0   :  { %1668 = vrot.lane.b32.xlu1 %v1666_v58, %s2702_s24 }
0x2142   :  { %v1669_v47 = vpop.permute.xlu1 %1668 }
0x2143   :  { %2367 = vmatmul.mubr.msk.f32.vlgmr.msra.gmra.mrb[20].mxu1 %vm108_vm1, %v1669_v47 }
0x2144   :  { %2451 = vmatpush3.bf16.msra.mxu1 %v2999_v51  ;;  %2384 = vmatprep.mubr.msk.f32.mxu1 %vm2697_vm0, %v2698_v1 }
0x2145   :  { %2382 = vmatprep.subr.mxu1 %v2698_v1 }
0x2148   :  { %2383 = vmatpush3.msk.msra.mxu1 %vm133_vm2, %v3003_v52 }
0x2216   :  { %v1738_v60 = vpop.f32.mrb[20].mxu1 }
0x2217   :  { %v1742_v62 = vadd.f32 %v1738_v60, %v1156_v59  ;;  %v2368_v63 = vpop.f32.mrb[21].mxu1 }
0x2219   :  { %2572 = vtanh.f32 %v1742_v62  ;;  %v1743_v3 = vsub.f32 0.0, %v1742_v62 }
0x221b   :  { %v1744_v51 = vmul.f32 1.442695, %v1743_v3 }
0x221d   :  { %2574 = vpow2.f32 %v1744_v51 }
0x2223   :  { %v2573_v2 = vpop.eup %2572 }
0x2224   :  { %1752 = vrot.lane.b32.xlu0 %v2573_v2, %s2699_s20 }
0x2227   :  { %v2575_v4 = vpop.eup %2574 }
0x2228   :  { %v1746_v5 = vadd.f32 1.0, %v2575_v4 }
0x222a   :  { %2576 = vrcp.f32 %v1746_v5 }
0x2234   :  { %v2577_v12 = vpop.eup %2576 }
0x2235   :  { %v1750_v52 = vmul.f32 %v2577_v12, %v1660_v54 }
0x2296   :  { %v1753_v24 = vpop.permute.xlu0 %1752 }
0x2297   :  { %v1755_v22 = vmul.f32 %v2577_v12, %v1753_v24 }
0x2299   :  { %1757 = vrot.lane.b32.xlu1 %v1755_v22, %s2700_s3 }
0x230b   :  { %v1758_v37 = vpop.permute.xlu1 %1757 }
0x230c   :  { %v1760_v6 = vadd.f32 %v1758_v37, %v1750_v52 }
0x230e   :  { %2578 = vtanh.f32 %v1760_v6 }
0x2318   :  { %v2579_v7 = vpop.eup %2578 }
0x2319   :  { %1763 = vrot.lane.b32.xlu0 %v2579_v7, %s2701_s23 }
0x238b   :  { %v1764_v8 = vpop.permute.xlu0 %1763 }
0x238c   :  { %v1766_v9 = vmul.f32 %v2577_v12, %v1764_v8 }
0x238e   :  { %1768 = vrot.lane.b32.xlu1 %v1766_v9, %s2702_s24 }
0x2400   :  { %v1769_v14 = vpop.permute.xlu1 %1768 }
0x2401   :  { %2376 = vmatmul.mubr.msk.f32.vlgmr.msra.gmra.mrb[22].mxu0 %vm108_vm1, %v1769_v14 }
0x2402   :  { %2393 = vmatprep.mubr.msk.f32.mxu0 %vm2697_vm0, %v2698_v1  ;;  %2454 = vmatpush3.bf16.msra.mxu0 %v2453_v53 }
0x2403   :  { %2391 = vmatprep.subr.mxu0 %v2698_v1  ;;  %v2114_v1 = vld [vmem:[%s3165_s8] ss:$0 sm:$0xff] }
0x2406   :  { %2392 = vmatpush3.msk.msra.mxu0 %vm133_vm2, %v1969_v0 }
0x24d4   :  { %v1838_v15 = vpop.f32.mrb[22].mxu0 }
0x24d5   :  { %v1842_v16 = vadd.f32 %v1838_v15, %v1161_v10  ;;  %v2377_v17 = vpop.f32.mrb[23].mxu0 }
0x24d7   :  { %2580 = vtanh.f32 %v1842_v16  ;;  %v1843_v19 = vsub.f32 0.0, %v1842_v16 }
0x24d9   :  { %v1844_v20 = vmul.f32 1.442695, %v1843_v19 }
0x24db   :  { %2582 = vpow2.f32 %v1844_v20 }
0x24e1   :  { %v2581_v18 = vpop.eup %2580 }
0x24e2   :  { %1852 = vrot.lane.b32.xlu0 %v2581_v18, %s2699_s20 }
0x24e5   :  { %v2583_v21 = vpop.eup %2582 }
0x24e6   :  { %v1846_v25 = vadd.f32 1.0, %v2583_v21 }
0x24e8   :  { %2584 = vrcp.f32 %v1846_v25 }
0x24f2   :  { %v2585_v26 = vpop.eup %2584 }
0x24f3   :  { %v1850_v29 = vmul.f32 %v2585_v26, %v1760_v6 }
0x2554   :  { %v1853_v27 = vpop.permute.xlu0 %1852 }
0x2555   :  { %v1855_v28 = vmul.f32 %v2585_v26, %v1853_v27 }
0x2557   :  { %1857 = vrot.lane.b32.xlu1 %v1855_v28, %s2700_s3 }
0x25c9   :  { %v1858_v13 = vpop.permute.xlu1 %1857 }
0x25ca   :  { %v1860_v33 = vadd.f32 %v1858_v13, %v1850_v29 }
0x25cc   :  { %2586 = vtanh.f32 %v1860_v33 }
0x25d6   :  { %v2587_v30 = vpop.eup %2586 }
0x25d7   :  { %1863 = vrot.lane.b32.xlu0 %v2587_v30, %s2701_s23 }
0x2649   :  { %v1864_v31 = vpop.permute.xlu0 %1863 }
0x264a   :  { %v1866_v35 = vmul.f32 %v2585_v26, %v1864_v31 }
0x264c   :  { %1868 = vrot.lane.b32.xlu1 %v1866_v35, %s2702_s24 }
0x26be   :  { %v1869_v32 = vpop.permute.xlu1 %1868 }
0x26bf   :  { %2385 = vmatmul.mubr.msk.f32.vlgmr.msra.gmra.mrb[22].mxu1 %vm108_vm1, %v1869_v32 }
0x2792   :  { %v1938_v34 = vpop.f32.mrb[22].mxu1 }
0x2793   :  { %v1942_v36 = vadd.f32 %v1938_v34, %v1166_v56  ;;  %v2386_v39 = vpop.f32.mrb[23].mxu1 }
0x2795   :  { %2588 = vtanh.f32 %v1942_v36  ;;  %v1943_v40 = vsub.f32 0.0, %v1942_v36 }
0x2797   :  { %v1944_v41 = vmul.f32 1.442695, %v1943_v40 }
0x2799   :  { %2590 = vpow2.f32 %v1944_v41 }
0x279f   :  { %v2589_v23 = vpop.eup %2588 }
0x27a0   :  { %1952 = vrot.lane.b32.xlu0 %v2589_v23, %s2699_s20 }
0x27a3   :  { %v2591_v42 = vpop.eup %2590 }
0x27a4   :  { %v1946_v43 = vadd.f32 1.0, %v2591_v42 }
0x27a6   :  { %2592 = vrcp.f32 %v1946_v43 }
0x27b0   :  { %v2593_v44 = vpop.eup %2592 }
0x27b1   :  { %v1950_v48 = vmul.f32 %v2593_v44, %v1860_v33 }
0x2812   :  { %v1953_v45 = vpop.permute.xlu0 %1952 }
0x2813   :  { %v1955_v46 = vmul.f32 %v2593_v44, %v1953_v45 }
0x2815   :  { %1957 = vrot.lane.b32.xlu1 %v1955_v46, %s2700_s3 }
0x2887   :  { %v1958_v61 = vpop.permute.xlu1 %1957 }
0x2888   :  { %v1960_v11 = vadd.f32 %v1958_v61, %v1950_v48 }
0x288a   :  { %2594 = vtanh.f32 %v1960_v11 }
0x2894   :  { %v2595_v38 = vpop.eup %2594 }
0x2895   :  { %1963 = vrot.lane.b32.xlu0 %v2595_v38, %s2701_s23 }
0x2907   :  { %v1964_v54 = vpop.permute.xlu0 %1963 }
0x2908   :  { %v1966_v55 = vmul.f32 %v2593_v44, %v1964_v54 }
0x290a   :  { %1978 = vrot.lane.b32.xlu1 %v1966_v55, %s2702_s24 }
0x297c   :  { %v1979_v57 = vpop.permute.xlu1 %1978 }
0x297d   :  { %2394 = vmatmul.mubr.msk.f32.vlgmr.msra.gmra.mrb[24].mxu0 %vm108_vm1, %v1979_v57 }
0x2a50   :  { %v2051_v58 = vpop.f32.mrb[24].mxu0 }
0x2a51   :  { %v2052_v47 = vadd.f32 %v2114_v1, %v2051_v58  ;;  %v2395_v59 = vpop.f32.mrb[25].mxu0 }
0x2a53   :  { %2056 = vst.msk [vmem:[%s3166_s9] sm:$0xff] %vm2055_vm3, %v2052_v47 }
0x2a54   :  { %2061 = vsyncpa [#allocation3], 1 }
0x2a55   :  { %2062 = vsyncpa [#allocation5], 1 }
0x2a56   :  { %2063 = vsyncpa [#allocation8], 1 }

</bundles_post_ra>
